<compile_context>
chip_gen: v7x
topology: tpu7x:2x2x1
jax: 0.10.0
libtpu: 0.0.40
codegen_flags: <defaults>
</compile_context>

<pallas_src>
import functools

import jax
import jax.numpy as jnp
from jax.experimental import pallas as pl
from jax.experimental.pallas import tpu as pltpu


def _layer_cfg(h_in, w_in, c_in, c_out, *, kernel, padding, pool_k, pool_stride):
  """Static geometry of one Conv(3x3, stride 1, pad) -> ReLU -> BN -> MaxPool."""
  h_pad, w_pad = h_in + 2 * padding, w_in + 2 * padding
  h_out, w_out = h_pad - kernel + 1, w_pad - kernel + 1        # conv stride 1
  h_pool = (h_out - pool_k) // pool_stride + 1                 # floor mode
  w_pool = (w_out - pool_k) // pool_stride + 1
  s_flat = h_out * w_pad        # conv output incl. "wrap-around" junk columns
  flat_len = max(h_pad * w_pad, (kernel - 1) * w_pad + (kernel - 1) + s_flat)
  return dict(c_in=c_in, c_out=c_out, h_pad=h_pad, w_pad=w_pad,
              h_out=h_out, w_out=w_out, h_pool=h_pool, w_pool=w_pool,
              s_flat=s_flat, flat_len=flat_len, kernel=kernel, padding=padding)


def _fused_cnn_kernel(x_ref, w1_ref, w2_ref, w3_ref, aff_ref, o_ref,
                      xp2_ref, xp3_ref, *, cfgs, aff_offsets):
  """layer1 -> layer2 -> layer3 for one batch element, fully in VMEM.

  x_ref:   (1, C0, flat_len1)  host-padded, row-flattened input, f32
  w*_ref:  (9, C_out, C_in)    per-tap conv weights, bf16
  aff_ref: (sum 3*C_out, 1)    [conv bias; BN scale; BN bias] per layer, f32
  o_ref:   (1, C3, H3*W3)      pooled layer-3 output, f32
  xp*_ref: (C_in, flat_len)    zero-padded, row-flattened activations, f32
  """
  # Scratch is uninitialised: the pad borders / junk tail of the inter-layer
  # buffers must be zero.  Interiors are fully rewritten every step, and this
  # is only a few vector stores, so zero every step (a program_id==0 guard
  # would be unsafe under megacore-parallel grids).
  xp2_ref[...] = jnp.zeros_like(xp2_ref)
  xp3_ref[...] = jnp.zeros_like(xp3_ref)

  def conv_relu_bn_pool(layer, x_bf16, w_ref, emit_row):
    cfg = cfgs[layer]
    ks, w_pad, s_flat = cfg["kernel"], cfg["w_pad"], cfg["s_flat"]
    c_out, w_out, w_pool = cfg["c_out"], cfg["w_out"], cfg["w_pool"]

    # Conv as 9 per-tap MXU matmuls accumulated in f32 (no materialised
    # im2col): with conv stride 1, tap (kh, kw)'s contribution to every
    # flattened output position is one contiguous lane window of the
    # row-flattened padded input (columns where the window wraps into the
    # next row are junk and are never read by the pooling below).
    acc = jnp.zeros((c_out, s_flat), jnp.float32)
    for kh in range(ks):
      for kw in range(ks):
        off = kh * w_pad + kw
        acc = acc + jnp.dot(w_ref[kh * ks + kw],
                            x_bf16[:, off:off + s_flat],
                            preferred_element_type=jnp.float32)

    # Fused conv-bias + ReLU + BatchNorm (inference affine); f32 on the VPU.
    a0 = aff_offsets[layer]
    conv_b = aff_ref[a0:a0 + c_out, :]
    bn_scale = aff_ref[a0 + c_out:a0 + 2 * c_out, :]
    bn_bias = aff_ref[a0 + 2 * c_out:a0 + 3 * c_out, :]
    y = jnp.maximum(acc + conv_b, 0.0) * bn_scale + bn_bias   # (c_out, s_flat)

    # MaxPool2d(2, 2), vectorised:
    #   h[:, c]     = max(y[c], y[c+1])           (two shifted contiguous slices)
    #   v[:, c]     = max over the 2 pool rows    (two contiguous row windows)
    #   compaction  = pick even columns via a 0/1 selection matmul (exact:
    #                 each output column selects exactly one element), then
    #                 emit one lane-dense pooled row per store.
    h = jnp.maximum(y[:, :s_flat - 1], y[:, 1:])
    sel = (jax.lax.broadcasted_iota(jnp.int32, (w_out, w_pool), 0) ==
           2 * jax.lax.broadcasted_iota(jnp.int32, (w_out, w_pool), 1)
           ).astype(jnp.float32)
    for i in range(cfg["h_pool"]):
      r0 = (2 * i) * w_pad
      r1 = (2 * i + 1) * w_pad
      v = jnp.maximum(h[:, r0:r0 + w_out], h[:, r1:r1 + w_out])   # (c_out, w_out)
      emit_row(i, jnp.dot(v, sel, preferred_element_type=jnp.float32))

  # layer 1: reads the host-padded input block; pooled rows -> layer-2 buffer.
  d2 = cfgs[1]
  def to_xp2(i, row):
    off = (d2["padding"] + i) * d2["w_pad"] + d2["padding"]
    xp2_ref[:, off:off + row.shape[1]] = row
  conv_relu_bn_pool(0, x_ref[0].astype(jnp.bfloat16), w1_ref, to_xp2)

  # layer 2: pooled rows -> layer-3 buffer (stays in VMEM).
  d3 = cfgs[2]
  def to_xp3(i, row):
    off = (d3["padding"] + i) * d3["w_pad"] + d3["padding"]
    xp3_ref[:, off:off + row.shape[1]] = row
  conv_relu_bn_pool(1, xp2_ref[...].astype(jnp.bfloat16), w2_ref, to_xp3)

  # layer 3: pooled rows go straight to the (1, C3, H3*W3) output block.
  w_pool3 = cfgs[2]["w_pool"]
  def to_out(i, row):
    o_ref[0, :, i * w_pool3:(i + 1) * w_pool3] = row
  conv_relu_bn_pool(2, xp3_ref[...].astype(jnp.bfloat16), w3_ref, to_out)


def _pack_weights(w):
  """(KH, KW, C_in, C_out) conv weights -> (KH*KW, C_out, C_in) bf16 taps."""
  ks, _, c_in, c_out = w.shape
  return jnp.transpose(w.reshape(ks * ks, c_in, c_out), (0, 2, 1)).astype(
      jnp.bfloat16)


def cnn_speech_classifier_2d_forward(x_nchw, params, *, stride, padding,
                                     kernel_pool, stride_pool):
  """Reproduces CNNSpeechClassifier2D.forward up to the SystemExit point."""
  if stride != 1:
    raise NotImplementedError(
        "the flattened-window conv assumes conv stride 1 (the module config)")
  if kernel_pool != 2 or stride_pool != 2:
    raise NotImplementedError(
        "the vectorised pooling path assumes MaxPool2d(2, stride=2)")

  n, c0, h, w = x_nchw.shape
  w1, b1, s1, bb1 = params["layer1"]
  w2, b2, s2, bb2 = params["layer2"]
  w3, b3, s3, bb3 = params["layer3"]
  ks = w1.shape[0]
  c1, c2, c3 = w1.shape[-1], w2.shape[-1], w3.shape[-1]

  cfg1 = _layer_cfg(h, w, c0, c1, kernel=ks, padding=padding,
                    pool_k=kernel_pool, pool_stride=stride_pool)
  cfg2 = _layer_cfg(cfg1["h_pool"], cfg1["w_pool"], c1, c2, kernel=ks,
                    padding=padding, pool_k=kernel_pool,
                    pool_stride=kernel_pool)   # MaxPool2d default stride=kernel
  cfg3 = _layer_cfg(cfg2["h_pool"], cfg2["w_pool"], c2, c3, kernel=ks,
                    padding=padding, pool_k=kernel_pool,
                    pool_stride=kernel_pool)
  cfgs = (cfg1, cfg2, cfg3)
  for cfg in cfgs:
    if cfg["h_out"] % 2 or cfg["w_out"] % 2:
      raise NotImplementedError("pairwise pooling assumes even conv output dims")

  w1p, w2p, w3p = _pack_weights(w1), _pack_weights(w2), _pack_weights(w3)

  # conv bias, BN scale, BN bias of all three layers in one packed f32 input.
  aff = jnp.concatenate(
      [b1, s1, bb1, b2, s2, bb2, b3, s3, bb3]).astype(jnp.float32).reshape(-1, 1)
  aff_offsets = (0, 3 * c1, 3 * (c1 + c2))

  # Zero-pad + row-flatten the layer-1 input on the host so the kernel's tap
  # windows read the input block directly (no in-kernel staging stores or
  # zero fill for layer 1).
  xpad = jnp.pad(x_nchw.astype(jnp.float32),
                 ((0, 0), (0, 0), (padding, padding), (padding, padding)))
  xflat = xpad.reshape(n, c0, cfg1["h_pad"] * cfg1["w_pad"])
  tail = cfg1["flat_len"] - cfg1["h_pad"] * cfg1["w_pad"]
  if tail:
    xflat = jnp.pad(xflat, ((0, 0), (0, 0), (0, tail)))

  out_spatial = cfg3["h_pool"] * cfg3["w_pool"]
  flops = 2 * n * sum(9 * c["c_in"] * c["c_out"] * c["h_out"] * c["w_out"]
                      for c in cfgs)
  bytes_accessed = (xflat.size * 4 + (w1p.size + w2p.size + w3p.size) * 2 +
                    aff.size * 4 + n * c3 * out_spatial * 4)

  kernel_fn = functools.partial(_fused_cnn_kernel, cfgs=cfgs,
                                aff_offsets=aff_offsets)

  out_flat = pl.pallas_call(
      kernel_fn,
      out_shape=jax.ShapeDtypeStruct((n, c3, out_spatial), jnp.float32),
      grid=(n,),
      in_specs=[
          pl.BlockSpec((1, c0, cfg1["flat_len"]), lambda i: (i, 0, 0)),
          pl.BlockSpec(w1p.shape, lambda i: (0, 0, 0)),
          pl.BlockSpec(w2p.shape, lambda i: (0, 0, 0)),
          pl.BlockSpec(w3p.shape, lambda i: (0, 0, 0)),
          pl.BlockSpec(aff.shape, lambda i: (0, 0)),
      ],
      out_specs=pl.BlockSpec((1, c3, out_spatial), lambda i: (i, 0, 0)),
      scratch_shapes=[
          pltpu.VMEM((c1, cfg2["flat_len"]), jnp.float32),
          pltpu.VMEM((c2, cfg3["flat_len"]), jnp.float32),
      ],
      compiler_params=pltpu.CompilerParams(
          dimension_semantics=("parallel",)),
      cost_estimate=pl.CostEstimate(flops=flops, transcendentals=0,
                                    bytes_accessed=bytes_accessed),
  )(xflat, w1p, w2p, w3p, aff)
  return out_flat.reshape(n, c3, cfg3["h_pool"], cfg3["w_pool"])


def _conv_init(key, c_in, c_out, ks):
  """Deterministic Conv2d-style init; weights laid out (KH, KW, C_in, C_out)."""
  kw_, kb_ = jax.random.split(key)
  fan_in = c_in * ks * ks
  bound = 1.0 / (fan_in ** 0.5)
  w = jax.random.uniform(kw_, (ks, ks, c_in, c_out), jnp.float32, -bound, bound)
  b = jax.random.uniform(kb_, (c_out,), jnp.float32, -bound, bound)
  return w, b


def _bn_init(key, c, eps=1e-5):
  """Deterministic BatchNorm2d (inference) params folded into scale/bias."""
  kg, kb, km, kv = jax.random.split(key, 4)
  gamma = jax.random.uniform(kg, (c,), jnp.float32, 0.5, 1.5)
  beta = jax.random.uniform(kb, (c,), jnp.float32, -0.5, 0.5)
  mean = jax.random.uniform(km, (c,), jnp.float32, -0.1, 0.1)
  var = jax.random.uniform(kv, (c,), jnp.float32, 0.5, 1.5)
  scale = gamma / jnp.sqrt(var + eps)
  bias = beta - mean * scale
  return scale, bias


def _reference_forward(x_nchw, params, *, stride, padding, kernel_pool,
                       stride_pool, matmul_dtype=jnp.float32):
  """Pure-JAX (XLA) reference used to validate the fused Pallas kernel."""
  def layer(x, w, b, sc, bb, conv_stride, pool_stride):
    y = jax.lax.conv_general_dilated(
        x.astype(matmul_dtype), w.astype(matmul_dtype),
        window_strides=(conv_stride, conv_stride),
        padding=[(padding, padding), (padding, padding)],
        dimension_numbers=("NCHW", "HWIO", "NCHW"),
        preferred_element_type=jnp.float32,
        precision=jax.lax.Precision.HIGHEST)
    y = y + b[None, :, None, None]
    y = jnp.maximum(y, 0.0)
    y = y * sc[None, :, None, None] + bb[None, :, None, None]
    return jax.lax.reduce_window(
        y, -jnp.inf, jax.lax.max,
        (1, 1, kernel_pool, kernel_pool), (1, 1, pool_stride, pool_stride),
        "VALID")

  x = x_nchw.astype(jnp.float32)
  w, b, sc, bb = params["layer1"]
  x = layer(x, w, b, sc, bb, stride, stride_pool)
  w, b, sc, bb = params["layer2"]
  x = layer(x, w, b, sc, bb, 1, kernel_pool)
  w, b, sc, bb = params["layer3"]
  x = layer(x, w, b, sc, bb, 1, kernel_pool)
  return x


if __name__ == "__main__":
  # Module hyperparameters (small, consistent with the forward).
  channel_inputs = 4
  num_channels1, num_channels2, num_channels3 = 8, 16, 32
  kernel_size, stride, padding = 3, 1, 1
  kernel_pool, stride_pool = 2, 2
  batch, height, width = 2, 16, 16

  key = jax.random.PRNGKey(0)
  kx, k1c, k1b, k2c, k2b, k3c, k3b = jax.random.split(key, 7)

  params = {}
  w1, b1 = _conv_init(k1c, channel_inputs, num_channels1, kernel_size)
  s1, bb1 = _bn_init(k1b, num_channels1)
  params["layer1"] = (w1, b1, s1, bb1)
  w2, b2 = _conv_init(k2c, num_channels1, num_channels2, kernel_size)
  s2, bb2 = _bn_init(k2b, num_channels2)
  params["layer2"] = (w2, b2, s2, bb2)
  w3, b3 = _conv_init(k3c, num_channels2, num_channels3, kernel_size)
  s3, bb3 = _bn_init(k3b, num_channels3)
  params["layer3"] = (w3, b3, s3, bb3)

  x = jax.random.normal(kx, (batch, channel_inputs, height, width),
                        jnp.float32)  # NCHW, as PyTorch would receive

  out = cnn_speech_classifier_2d_forward(
      x, params, stride=stride, padding=padding,
      kernel_pool=kernel_pool, stride_pool=stride_pool)
  out = jax.block_until_ready(out)

  # Shape the reference forward prints before raising SystemExit
  # (cnn_layer4 / dropout / fc are unreachable dead code).
  assert out.shape == (batch, num_channels3, 2, 2), out.shape

  # Tight check vs. a reference that also feeds the convs bf16 inputs
  # (validates the kernel math), loose check vs. the full-f32 reference
  # (residual gap is the bf16 MXU input rounding).
  ref_bf16 = _reference_forward(
      x, params, stride=stride, padding=padding, kernel_pool=kernel_pool,
      stride_pool=stride_pool, matmul_dtype=jnp.bfloat16)
  err_bf16 = float(jnp.max(jnp.abs(out - ref_bf16)))
  assert jnp.allclose(out, ref_bf16, atol=5e-3, rtol=5e-3), err_bf16

  ref_f32 = _reference_forward(
      x, params, stride=stride, padding=padding, kernel_pool=kernel_pool,
      stride_pool=stride_pool, matmul_dtype=jnp.float32)
  err_f32 = float(jnp.max(jnp.abs(out - ref_f32)))
  assert jnp.allclose(out, ref_f32, atol=5e-2, rtol=5e-2), err_f32

  print("KERNEL_OK")
</pallas_src>

<mosaic_0001>
module attributes {stable_mosaic.version = 11 : i64} {
  func.func @_fused_cnn_kernel(%arg0: i32, %arg1: memref<1x4x326xf32, #tpu.memory_space<vmem>>, %arg2: memref<9x8x4xbf16, #tpu.memory_space<vmem>>, %arg3: memref<9x16x8xbf16, #tpu.memory_space<vmem>>, %arg4: memref<9x32x16xbf16, #tpu.memory_space<vmem>>, %arg5: memref<168x1xf32, #tpu.memory_space<vmem>>, %arg6: memref<1x32x4xf32, #tpu.memory_space<vmem>>, %arg7: memref<8x102xf32, #tpu.memory_space<vmem>>, %arg8: memref<16x38xf32, #tpu.memory_space<vmem>>) attributes {dimension_semantics = [#tpu.dimension_semantics<parallel>], iteration_bounds = array<i64: 2>, scalar_prefetch = 0 : i64, scratch_operands = 2 : i64, tpu.core_type = #tpu.core_type<tc>, window_params = [{transform_indices = @transform_0, window_bounds = array<i64: 1, 4, 326>}, {pipeline_mode = #tpu.pipeline_mode<synchronous>, transform_indices = @transform_1, window_bounds = array<i64: 9, 8, 4>}, {pipeline_mode = #tpu.pipeline_mode<synchronous>, transform_indices = @transform_2, window_bounds = array<i64: 9, 16, 8>}, {pipeline_mode = #tpu.pipeline_mode<synchronous>, transform_indices = @transform_3, window_bounds = array<i64: 9, 32, 16>}, {pipeline_mode = #tpu.pipeline_mode<synchronous>, transform_indices = @transform_4, window_bounds = array<i64: 168, 1>}, {transform_indices = @transform_5, window_bounds = array<i64: 1, 32, 4>}]} {
    %cst = arith.constant 0.000000e+00 : f32
    %0 = vector.broadcast %cst : f32 to vector<8x102xf32>
    %c0 = arith.constant 0 : index
    %c0_0 = arith.constant 0 : index
    %1 = vector.load %arg7[%c0, %c0_0] : memref<8x102xf32, #tpu.memory_space<vmem>>, vector<8x102xf32>
    tpu.vector_store %arg7[%c0, %c0_0], %0 {strides = array<i32>} : memref<8x102xf32, #tpu.memory_space<vmem>>, vector<8x102xf32>,
    %cst_1 = arith.constant 0.000000e+00 : f32
    %2 = vector.broadcast %cst_1 : f32 to vector<16x38xf32>
    %c0_2 = arith.constant 0 : index
    %c0_3 = arith.constant 0 : index
    %3 = vector.load %arg8[%c0_2, %c0_3] : memref<16x38xf32, #tpu.memory_space<vmem>>, vector<16x38xf32>
    tpu.vector_store %arg8[%c0_2, %c0_3], %2 {strides = array<i32>} : memref<16x38xf32, #tpu.memory_space<vmem>>, vector<16x38xf32>,
    %c0_4 = arith.constant 0 : index
    %c0_5 = arith.constant 0 : index
    %c0_6 = arith.constant 0 : index
    %4 = vector.load %arg1[%c0_4, %c0_5, %c0_6] : memref<1x4x326xf32, #tpu.memory_space<vmem>>, vector<1x4x326xf32>
    %5 = vector.shape_cast %4 : vector<1x4x326xf32> to vector<4x326xf32>
    %6 = arith.truncf %5 : vector<4x326xf32> to vector<4x326xbf16>
    %cst_7 = arith.constant 0.000000e+00 : f32
    %7 = vector.broadcast %cst_7 : f32 to vector<8x288xf32>
    %c0_8 = arith.constant 0 : index
    %c0_9 = arith.constant 0 : index
    %c0_10 = arith.constant 0 : index
    %8 = vector.load %arg2[%c0_8, %c0_9, %c0_10] : memref<9x8x4xbf16, #tpu.memory_space<vmem>>, vector<1x8x4xbf16>
    %9 = vector.shape_cast %8 : vector<1x8x4xbf16> to vector<8x4xbf16>
    %10 = vector.extract_strided_slice %6 {offsets = [0, 0], sizes = [4, 288], strides = [1, 1]} : vector<4x326xbf16> to vector<4x288xbf16>
    %cst_11 = arith.constant dense<0.000000e+00> : vector<8x288xf32>
    %11 = tpu.matmul %9, %10, %cst_11 {dimension_numbers = #tpu.dot_dimension_numbers<[1], [0], [0], [1], [0, 0, 1, 1], [], []>} : vector<8x4xbf16>, vector<4x288xbf16>, vector<8x288xf32> -> vector<8x288xf32>
    %12 = arith.addf %7, %11 : vector<8x288xf32>
    %c1 = arith.constant 1 : index
    %c0_12 = arith.constant 0 : index
    %c0_13 = arith.constant 0 : index
    %13 = vector.load %arg2[%c1, %c0_12, %c0_13] : memref<9x8x4xbf16, #tpu.memory_space<vmem>>, vector<1x8x4xbf16>
    %14 = vector.shape_cast %13 : vector<1x8x4xbf16> to vector<8x4xbf16>
    %15 = vector.extract_strided_slice %6 {offsets = [0, 1], sizes = [4, 288], strides = [1, 1]} : vector<4x326xbf16> to vector<4x288xbf16>
    %cst_14 = arith.constant dense<0.000000e+00> : vector<8x288xf32>
    %16 = tpu.matmul %14, %15, %cst_14 {dimension_numbers = #tpu.dot_dimension_numbers<[1], [0], [0], [1], [0, 0, 1, 1], [], []>} : vector<8x4xbf16>, vector<4x288xbf16>, vector<8x288xf32> -> vector<8x288xf32>
    %17 = arith.addf %12, %16 : vector<8x288xf32>
    %c2 = arith.constant 2 : index
    %c0_15 = arith.constant 0 : index
    %c0_16 = arith.constant 0 : index
    %18 = vector.load %arg2[%c2, %c0_15, %c0_16] : memref<9x8x4xbf16, #tpu.memory_space<vmem>>, vector<1x8x4xbf16>
    %19 = vector.shape_cast %18 : vector<1x8x4xbf16> to vector<8x4xbf16>
    %20 = vector.extract_strided_slice %6 {offsets = [0, 2], sizes = [4, 288], strides = [1, 1]} : vector<4x326xbf16> to vector<4x288xbf16>
    %cst_17 = arith.constant dense<0.000000e+00> : vector<8x288xf32>
    %21 = tpu.matmul %19, %20, %cst_17 {dimension_numbers = #tpu.dot_dimension_numbers<[1], [0], [0], [1], [0, 0, 1, 1], [], []>} : vector<8x4xbf16>, vector<4x288xbf16>, vector<8x288xf32> -> vector<8x288xf32>
    %22 = arith.addf %17, %21 : vector<8x288xf32>
    %c3 = arith.constant 3 : index
    %c0_18 = arith.constant 0 : index
    %c0_19 = arith.constant 0 : index
    %23 = vector.load %arg2[%c3, %c0_18, %c0_19] : memref<9x8x4xbf16, #tpu.memory_space<vmem>>, vector<1x8x4xbf16>
    %24 = vector.shape_cast %23 : vector<1x8x4xbf16> to vector<8x4xbf16>
    %25 = vector.extract_strided_slice %6 {offsets = [0, 18], sizes = [4, 288], strides = [1, 1]} : vector<4x326xbf16> to vector<4x288xbf16>
    %cst_20 = arith.constant dense<0.000000e+00> : vector<8x288xf32>
    %26 = tpu.matmul %24, %25, %cst_20 {dimension_numbers = #tpu.dot_dimension_numbers<[1], [0], [0], [1], [0, 0, 1, 1], [], []>} : vector<8x4xbf16>, vector<4x288xbf16>, vector<8x288xf32> -> vector<8x288xf32>
    %27 = arith.addf %22, %26 : vector<8x288xf32>
    %c4 = arith.constant 4 : index
    %c0_21 = arith.constant 0 : index
    %c0_22 = arith.constant 0 : index
    %28 = vector.load %arg2[%c4, %c0_21, %c0_22] : memref<9x8x4xbf16, #tpu.memory_space<vmem>>, vector<1x8x4xbf16>
    %29 = vector.shape_cast %28 : vector<1x8x4xbf16> to vector<8x4xbf16>
    %30 = vector.extract_strided_slice %6 {offsets = [0, 19], sizes = [4, 288], strides = [1, 1]} : vector<4x326xbf16> to vector<4x288xbf16>
    %cst_23 = arith.constant dense<0.000000e+00> : vector<8x288xf32>
    %31 = tpu.matmul %29, %30, %cst_23 {dimension_numbers = #tpu.dot_dimension_numbers<[1], [0], [0], [1], [0, 0, 1, 1], [], []>} : vector<8x4xbf16>, vector<4x288xbf16>, vector<8x288xf32> -> vector<8x288xf32>
    %32 = arith.addf %27, %31 : vector<8x288xf32>
    %c5 = arith.constant 5 : index
    %c0_24 = arith.constant 0 : index
    %c0_25 = arith.constant 0 : index
    %33 = vector.load %arg2[%c5, %c0_24, %c0_25] : memref<9x8x4xbf16, #tpu.memory_space<vmem>>, vector<1x8x4xbf16>
    %34 = vector.shape_cast %33 : vector<1x8x4xbf16> to vector<8x4xbf16>
    %35 = vector.extract_strided_slice %6 {offsets = [0, 20], sizes = [4, 288], strides = [1, 1]} : vector<4x326xbf16> to vector<4x288xbf16>
    %cst_26 = arith.constant dense<0.000000e+00> : vector<8x288xf32>
    %36 = tpu.matmul %34, %35, %cst_26 {dimension_numbers = #tpu.dot_dimension_numbers<[1], [0], [0], [1], [0, 0, 1, 1], [], []>} : vector<8x4xbf16>, vector<4x288xbf16>, vector<8x288xf32> -> vector<8x288xf32>
    %37 = arith.addf %32, %36 : vector<8x288xf32>
    %c6 = arith.constant 6 : index
    %c0_27 = arith.constant 0 : index
    %c0_28 = arith.constant 0 : index
    %38 = vector.load %arg2[%c6, %c0_27, %c0_28] : memref<9x8x4xbf16, #tpu.memory_space<vmem>>, vector<1x8x4xbf16>
    %39 = vector.shape_cast %38 : vector<1x8x4xbf16> to vector<8x4xbf16>
    %40 = vector.extract_strided_slice %6 {offsets = [0, 36], sizes = [4, 288], strides = [1, 1]} : vector<4x326xbf16> to vector<4x288xbf16>
    %cst_29 = arith.constant dense<0.000000e+00> : vector<8x288xf32>
    %41 = tpu.matmul %39, %40, %cst_29 {dimension_numbers = #tpu.dot_dimension_numbers<[1], [0], [0], [1], [0, 0, 1, 1], [], []>} : vector<8x4xbf16>, vector<4x288xbf16>, vector<8x288xf32> -> vector<8x288xf32>
    %42 = arith.addf %37, %41 : vector<8x288xf32>
    %c7 = arith.constant 7 : index
    %c0_30 = arith.constant 0 : index
    %c0_31 = arith.constant 0 : index
    %43 = vector.load %arg2[%c7, %c0_30, %c0_31] : memref<9x8x4xbf16, #tpu.memory_space<vmem>>, vector<1x8x4xbf16>
    %44 = vector.shape_cast %43 : vector<1x8x4xbf16> to vector<8x4xbf16>
    %45 = vector.extract_strided_slice %6 {offsets = [0, 37], sizes = [4, 288], strides = [1, 1]} : vector<4x326xbf16> to vector<4x288xbf16>
    %cst_32 = arith.constant dense<0.000000e+00> : vector<8x288xf32>
    %46 = tpu.matmul %44, %45, %cst_32 {dimension_numbers = #tpu.dot_dimension_numbers<[1], [0], [0], [1], [0, 0, 1, 1], [], []>} : vector<8x4xbf16>, vector<4x288xbf16>, vector<8x288xf32> -> vector<8x288xf32>
    %47 = arith.addf %42, %46 : vector<8x288xf32>
    %c8 = arith.constant 8 : index
    %c0_33 = arith.constant 0 : index
    %c0_34 = arith.constant 0 : index
    %48 = vector.load %arg2[%c8, %c0_33, %c0_34] : memref<9x8x4xbf16, #tpu.memory_space<vmem>>, vector<1x8x4xbf16>
    %49 = vector.shape_cast %48 : vector<1x8x4xbf16> to vector<8x4xbf16>
    %50 = vector.extract_strided_slice %6 {offsets = [0, 38], sizes = [4, 288], strides = [1, 1]} : vector<4x326xbf16> to vector<4x288xbf16>
    %cst_35 = arith.constant dense<0.000000e+00> : vector<8x288xf32>
    %51 = tpu.matmul %49, %50, %cst_35 {dimension_numbers = #tpu.dot_dimension_numbers<[1], [0], [0], [1], [0, 0, 1, 1], [], []>} : vector<8x4xbf16>, vector<4x288xbf16>, vector<8x288xf32> -> vector<8x288xf32>
    %52 = arith.addf %47, %51 : vector<8x288xf32>
    %c0_36 = arith.constant 0 : index
    %c0_37 = arith.constant 0 : index
    %53 = vector.load %arg5[%c0_36, %c0_37] : memref<168x1xf32, #tpu.memory_space<vmem>>, vector<8x1xf32>
    %c8_38 = arith.constant 8 : index
    %c0_39 = arith.constant 0 : index
    %54 = vector.load %arg5[%c8_38, %c0_39] : memref<168x1xf32, #tpu.memory_space<vmem>>, vector<8x1xf32>
    %c16 = arith.constant 16 : index
    %c0_40 = arith.constant 0 : index
    %55 = vector.load %arg5[%c16, %c0_40] : memref<168x1xf32, #tpu.memory_space<vmem>>, vector<8x1xf32>
    %56 = vector.broadcast %53 : vector<8x1xf32> to vector<8x288xf32>
    %57 = arith.addf %52, %56 : vector<8x288xf32>
    %cst_41 = arith.constant 0.000000e+00 : f32
    %58 = vector.broadcast %cst_41 : f32 to vector<8x288xf32>
    %59 = arith.maximumf %57, %58 : vector<8x288xf32>
    %60 = vector.broadcast %54 : vector<8x1xf32> to vector<8x288xf32>
    %61 = arith.mulf %59, %60 : vector<8x288xf32>
    %62 = vector.broadcast %55 : vector<8x1xf32> to vector<8x288xf32>
    %63 = arith.addf %61, %62 : vector<8x288xf32>
    %64 = vector.extract_strided_slice %63 {offsets = [0, 0], sizes = [8, 287], strides = [1, 1]} : vector<8x288xf32> to vector<8x287xf32>
    %65 = vector.extract_strided_slice %63 {offsets = [0, 1], sizes = [8, 287], strides = [1, 1]} : vector<8x288xf32> to vector<8x287xf32>
    %66 = arith.maximumf %64, %65 : vector<8x287xf32>
    %67 = tpu.iota {dimensions = array<i32: 0>} : vector<16x8xi32>
    %68 = tpu.iota {dimensions = array<i32: 1>} : vector<16x8xi32>
    %c2_i32 = arith.constant 2 : i32
    %69 = vector.broadcast %c2_i32 : i32 to vector<16x8xi32>
    %70 = arith.muli %69, %68 : vector<16x8xi32>
    %71 = arith.cmpi eq, %67, %70 : vector<16x8xi32>
    %72 = arith.extui %71 : vector<16x8xi1> to vector<16x8xi32>
    %73 = arith.sitofp %72 : vector<16x8xi32> to vector<16x8xf32>
    %74 = vector.extract_strided_slice %66 {offsets = [0, 0], sizes = [8, 16], strides = [1, 1]} : vector<8x287xf32> to vector<8x16xf32>
    %75 = vector.extract_strided_slice %66 {offsets = [0, 18], sizes = [8, 16], strides = [1, 1]} : vector<8x287xf32> to vector<8x16xf32>
    %76 = arith.maximumf %74, %75 : vector<8x16xf32>
    %cst_42 = arith.constant dense<0.000000e+00> : vector<8x8xf32>
    %77 = tpu.matmul %76, %73, %cst_42 {dimension_numbers = #tpu.dot_dimension_numbers<[1], [0], [0], [1], [0, 0, 1, 1], [], []>} : vector<8x16xf32>, vector<16x8xf32>, vector<8x8xf32> -> vector<8x8xf32>
    %c0_43 = arith.constant 0 : index
    %c11 = arith.constant 11 : index
    %78 = vector.load %arg7[%c0_43, %c11] : memref<8x102xf32, #tpu.memory_space<vmem>>, vector<8x8xf32>
    tpu.vector_store %arg7[%c0_43, %c11], %77 {strides = array<i32>} : memref<8x102xf32, #tpu.memory_space<vmem>>, vector<8x8xf32>,
    %79 = vector.extract_strided_slice %66 {offsets = [0, 36], sizes = [8, 16], strides = [1, 1]} : vector<8x287xf32> to vector<8x16xf32>
    %80 = vector.extract_strided_slice %66 {offsets = [0, 54], sizes = [8, 16], strides = [1, 1]} : vector<8x287xf32> to vector<8x16xf32>
    %81 = arith.maximumf %79, %80 : vector<8x16xf32>
    %cst_44 = arith.constant dense<0.000000e+00> : vector<8x8xf32>
    %82 = tpu.matmul %81, %73, %cst_44 {dimension_numbers = #tpu.dot_dimension_numbers<[1], [0], [0], [1], [0, 0, 1, 1], [], []>} : vector<8x16xf32>, vector<16x8xf32>, vector<8x8xf32> -> vector<8x8xf32>
    %c0_45 = arith.constant 0 : index
    %c21 = arith.constant 21 : index
    %83 = vector.load %arg7[%c0_45, %c21] : memref<8x102xf32, #tpu.memory_space<vmem>>, vector<8x8xf32>
    tpu.vector_store %arg7[%c0_45, %c21], %82 {strides = array<i32>} : memref<8x102xf32, #tpu.memory_space<vmem>>, vector<8x8xf32>,
    %84 = vector.extract_strided_slice %66 {offsets = [0, 72], sizes = [8, 16], strides = [1, 1]} : vector<8x287xf32> to vector<8x16xf32>
    %85 = vector.extract_strided_slice %66 {offsets = [0, 90], sizes = [8, 16], strides = [1, 1]} : vector<8x287xf32> to vector<8x16xf32>
    %86 = arith.maximumf %84, %85 : vector<8x16xf32>
    %cst_46 = arith.constant dense<0.000000e+00> : vector<8x8xf32>
    %87 = tpu.matmul %86, %73, %cst_46 {dimension_numbers = #tpu.dot_dimension_numbers<[1], [0], [0], [1], [0, 0, 1, 1], [], []>} : vector<8x16xf32>, vector<16x8xf32>, vector<8x8xf32> -> vector<8x8xf32>
    %c0_47 = arith.constant 0 : index
    %c31 = arith.constant 31 : index
    %88 = vector.load %arg7[%c0_47, %c31] : memref<8x102xf32, #tpu.memory_space<vmem>>, vector<8x8xf32>
    tpu.vector_store %arg7[%c0_47, %c31], %87 {strides = array<i32>} : memref<8x102xf32, #tpu.memory_space<vmem>>, vector<8x8xf32>,
    %89 = vector.extract_strided_slice %66 {offsets = [0, 108], sizes = [8, 16], strides = [1, 1]} : vector<8x287xf32> to vector<8x16xf32>
    %90 = vector.extract_strided_slice %66 {offsets = [0, 126], sizes = [8, 16], strides = [1, 1]} : vector<8x287xf32> to vector<8x16xf32>
    %91 = arith.maximumf %89, %90 : vector<8x16xf32>
    %cst_48 = arith.constant dense<0.000000e+00> : vector<8x8xf32>
    %92 = tpu.matmul %91, %73, %cst_48 {dimension_numbers = #tpu.dot_dimension_numbers<[1], [0], [0], [1], [0, 0, 1, 1], [], []>} : vector<8x16xf32>, vector<16x8xf32>, vector<8x8xf32> -> vector<8x8xf32>
    %c0_49 = arith.constant 0 : index
    %c41 = arith.constant 41 : index
    %93 = vector.load %arg7[%c0_49, %c41] : memref<8x102xf32, #tpu.memory_space<vmem>>, vector<8x8xf32>
    tpu.vector_store %arg7[%c0_49, %c41], %92 {strides = array<i32>} : memref<8x102xf32, #tpu.memory_space<vmem>>, vector<8x8xf32>,
    %94 = vector.extract_strided_slice %66 {offsets = [0, 144], sizes = [8, 16], strides = [1, 1]} : vector<8x287xf32> to vector<8x16xf32>
    %95 = vector.extract_strided_slice %66 {offsets = [0, 162], sizes = [8, 16], strides = [1, 1]} : vector<8x287xf32> to vector<8x16xf32>
    %96 = arith.maximumf %94, %95 : vector<8x16xf32>
    %cst_50 = arith.constant dense<0.000000e+00> : vector<8x8xf32>
    %97 = tpu.matmul %96, %73, %cst_50 {dimension_numbers = #tpu.dot_dimension_numbers<[1], [0], [0], [1], [0, 0, 1, 1], [], []>} : vector<8x16xf32>, vector<16x8xf32>, vector<8x8xf32> -> vector<8x8xf32>
    %c0_51 = arith.constant 0 : index
    %c51 = arith.constant 51 : index
    %98 = vector.load %arg7[%c0_51, %c51] : memref<8x102xf32, #tpu.memory_space<vmem>>, vector<8x8xf32>
    tpu.vector_store %arg7[%c0_51, %c51], %97 {strides = array<i32>} : memref<8x102xf32, #tpu.memory_space<vmem>>, vector<8x8xf32>,
    %99 = vector.extract_strided_slice %66 {offsets = [0, 180], sizes = [8, 16], strides = [1, 1]} : vector<8x287xf32> to vector<8x16xf32>
    %100 = vector.extract_strided_slice %66 {offsets = [0, 198], sizes = [8, 16], strides = [1, 1]} : vector<8x287xf32> to vector<8x16xf32>
    %101 = arith.maximumf %99, %100 : vector<8x16xf32>
    %cst_52 = arith.constant dense<0.000000e+00> : vector<8x8xf32>
    %102 = tpu.matmul %101, %73, %cst_52 {dimension_numbers = #tpu.dot_dimension_numbers<[1], [0], [0], [1], [0, 0, 1, 1], [], []>} : vector<8x16xf32>, vector<16x8xf32>, vector<8x8xf32> -> vector<8x8xf32>
    %c0_53 = arith.constant 0 : index
    %c61 = arith.constant 61 : index
    %103 = vector.load %arg7[%c0_53, %c61] : memref<8x102xf32, #tpu.memory_space<vmem>>, vector<8x8xf32>
    tpu.vector_store %arg7[%c0_53, %c61], %102 {strides = array<i32>} : memref<8x102xf32, #tpu.memory_space<vmem>>, vector<8x8xf32>,
    %104 = vector.extract_strided_slice %66 {offsets = [0, 216], sizes = [8, 16], strides = [1, 1]} : vector<8x287xf32> to vector<8x16xf32>
    %105 = vector.extract_strided_slice %66 {offsets = [0, 234], sizes = [8, 16], strides = [1, 1]} : vector<8x287xf32> to vector<8x16xf32>
    %106 = arith.maximumf %104, %105 : vector<8x16xf32>
    %cst_54 = arith.constant dense<0.000000e+00> : vector<8x8xf32>
    %107 = tpu.matmul %106, %73, %cst_54 {dimension_numbers = #tpu.dot_dimension_numbers<[1], [0], [0], [1], [0, 0, 1, 1], [], []>} : vector<8x16xf32>, vector<16x8xf32>, vector<8x8xf32> -> vector<8x8xf32>
    %c0_55 = arith.constant 0 : index
    %c71 = arith.constant 71 : index
    %108 = vector.load %arg7[%c0_55, %c71] : memref<8x102xf32, #tpu.memory_space<vmem>>, vector<8x8xf32>
    tpu.vector_store %arg7[%c0_55, %c71], %107 {strides = array<i32>} : memref<8x102xf32, #tpu.memory_space<vmem>>, vector<8x8xf32>,
    %109 = vector.extract_strided_slice %66 {offsets = [0, 252], sizes = [8, 16], strides = [1, 1]} : vector<8x287xf32> to vector<8x16xf32>
    %110 = vector.extract_strided_slice %66 {offsets = [0, 270], sizes = [8, 16], strides = [1, 1]} : vector<8x287xf32> to vector<8x16xf32>
    %111 = arith.maximumf %109, %110 : vector<8x16xf32>
    %cst_56 = arith.constant dense<0.000000e+00> : vector<8x8xf32>
    %112 = tpu.matmul %111, %73, %cst_56 {dimension_numbers = #tpu.dot_dimension_numbers<[1], [0], [0], [1], [0, 0, 1, 1], [], []>} : vector<8x16xf32>, vector<16x8xf32>, vector<8x8xf32> -> vector<8x8xf32>
    %c0_57 = arith.constant 0 : index
    %c81 = arith.constant 81 : index
    %113 = vector.load %arg7[%c0_57, %c81] : memref<8x102xf32, #tpu.memory_space<vmem>>, vector<8x8xf32>
    tpu.vector_store %arg7[%c0_57, %c81], %112 {strides = array<i32>} : memref<8x102xf32, #tpu.memory_space<vmem>>, vector<8x8xf32>,
    %c0_58 = arith.constant 0 : index
    %c0_59 = arith.constant 0 : index
    %114 = vector.load %arg7[%c0_58, %c0_59] : memref<8x102xf32, #tpu.memory_space<vmem>>, vector<8x102xf32>
    %115 = arith.truncf %114 : vector<8x102xf32> to vector<8x102xbf16>
    %cst_60 = arith.constant 0.000000e+00 : f32
    %116 = vector.broadcast %cst_60 : f32 to vector<16x80xf32>
    %c0_61 = arith.constant 0 : index
    %c0_62 = arith.constant 0 : index
    %c0_63 = arith.constant 0 : index
    %117 = vector.load %arg3[%c0_61, %c0_62, %c0_63] : memref<9x16x8xbf16, #tpu.memory_space<vmem>>, vector<1x16x8xbf16>
    %118 = vector.shape_cast %117 : vector<1x16x8xbf16> to vector<16x8xbf16>
    %119 = vector.extract_strided_slice %115 {offsets = [0, 0], sizes = [8, 80], strides = [1, 1]} : vector<8x102xbf16> to vector<8x80xbf16>
    %cst_64 = arith.constant dense<0.000000e+00> : vector<16x80xf32>
    %120 = tpu.matmul %118, %119, %cst_64 {dimension_numbers = #tpu.dot_dimension_numbers<[1], [0], [0], [1], [0, 0, 1, 1], [], []>} : vector<16x8xbf16>, vector<8x80xbf16>, vector<16x80xf32> -> vector<16x80xf32>
    %121 = arith.addf %116, %120 : vector<16x80xf32>
    %c1_65 = arith.constant 1 : index
    %c0_66 = arith.constant 0 : index
    %c0_67 = arith.constant 0 : index
    %122 = vector.load %arg3[%c1_65, %c0_66, %c0_67] : memref<9x16x8xbf16, #tpu.memory_space<vmem>>, vector<1x16x8xbf16>
    %123 = vector.shape_cast %122 : vector<1x16x8xbf16> to vector<16x8xbf16>
    %124 = vector.extract_strided_slice %115 {offsets = [0, 1], sizes = [8, 80], strides = [1, 1]} : vector<8x102xbf16> to vector<8x80xbf16>
    %cst_68 = arith.constant dense<0.000000e+00> : vector<16x80xf32>
    %125 = tpu.matmul %123, %124, %cst_68 {dimension_numbers = #tpu.dot_dimension_numbers<[1], [0], [0], [1], [0, 0, 1, 1], [], []>} : vector<16x8xbf16>, vector<8x80xbf16>, vector<16x80xf32> -> vector<16x80xf32>
    %126 = arith.addf %121, %125 : vector<16x80xf32>
    %c2_69 = arith.constant 2 : index
    %c0_70 = arith.constant 0 : index
    %c0_71 = arith.constant 0 : index
    %127 = vector.load %arg3[%c2_69, %c0_70, %c0_71] : memref<9x16x8xbf16, #tpu.memory_space<vmem>>, vector<1x16x8xbf16>
    %128 = vector.shape_cast %127 : vector<1x16x8xbf16> to vector<16x8xbf16>
    %129 = vector.extract_strided_slice %115 {offsets = [0, 2], sizes = [8, 80], strides = [1, 1]} : vector<8x102xbf16> to vector<8x80xbf16>
    %cst_72 = arith.constant dense<0.000000e+00> : vector<16x80xf32>
    %130 = tpu.matmul %128, %129, %cst_72 {dimension_numbers = #tpu.dot_dimension_numbers<[1], [0], [0], [1], [0, 0, 1, 1], [], []>} : vector<16x8xbf16>, vector<8x80xbf16>, vector<16x80xf32> -> vector<16x80xf32>
    %131 = arith.addf %126, %130 : vector<16x80xf32>
    %c3_73 = arith.constant 3 : index
    %c0_74 = arith.constant 0 : index
    %c0_75 = arith.constant 0 : index
    %132 = vector.load %arg3[%c3_73, %c0_74, %c0_75] : memref<9x16x8xbf16, #tpu.memory_space<vmem>>, vector<1x16x8xbf16>
    %133 = vector.shape_cast %132 : vector<1x16x8xbf16> to vector<16x8xbf16>
    %134 = vector.extract_strided_slice %115 {offsets = [0, 10], sizes = [8, 80], strides = [1, 1]} : vector<8x102xbf16> to vector<8x80xbf16>
    %cst_76 = arith.constant dense<0.000000e+00> : vector<16x80xf32>
    %135 = tpu.matmul %133, %134, %cst_76 {dimension_numbers = #tpu.dot_dimension_numbers<[1], [0], [0], [1], [0, 0, 1, 1], [], []>} : vector<16x8xbf16>, vector<8x80xbf16>, vector<16x80xf32> -> vector<16x80xf32>
    %136 = arith.addf %131, %135 : vector<16x80xf32>
    %c4_77 = arith.constant 4 : index
    %c0_78 = arith.constant 0 : index
    %c0_79 = arith.constant 0 : index
    %137 = vector.load %arg3[%c4_77, %c0_78, %c0_79] : memref<9x16x8xbf16, #tpu.memory_space<vmem>>, vector<1x16x8xbf16>
    %138 = vector.shape_cast %137 : vector<1x16x8xbf16> to vector<16x8xbf16>
    %139 = vector.extract_strided_slice %115 {offsets = [0, 11], sizes = [8, 80], strides = [1, 1]} : vector<8x102xbf16> to vector<8x80xbf16>
    %cst_80 = arith.constant dense<0.000000e+00> : vector<16x80xf32>
    %140 = tpu.matmul %138, %139, %cst_80 {dimension_numbers = #tpu.dot_dimension_numbers<[1], [0], [0], [1], [0, 0, 1, 1], [], []>} : vector<16x8xbf16>, vector<8x80xbf16>, vector<16x80xf32> -> vector<16x80xf32>
    %141 = arith.addf %136, %140 : vector<16x80xf32>
    %c5_81 = arith.constant 5 : index
    %c0_82 = arith.constant 0 : index
    %c0_83 = arith.constant 0 : index
    %142 = vector.load %arg3[%c5_81, %c0_82, %c0_83] : memref<9x16x8xbf16, #tpu.memory_space<vmem>>, vector<1x16x8xbf16>
    %143 = vector.shape_cast %142 : vector<1x16x8xbf16> to vector<16x8xbf16>
    %144 = vector.extract_strided_slice %115 {offsets = [0, 12], sizes = [8, 80], strides = [1, 1]} : vector<8x102xbf16> to vector<8x80xbf16>
    %cst_84 = arith.constant dense<0.000000e+00> : vector<16x80xf32>
    %145 = tpu.matmul %143, %144, %cst_84 {dimension_numbers = #tpu.dot_dimension_numbers<[1], [0], [0], [1], [0, 0, 1, 1], [], []>} : vector<16x8xbf16>, vector<8x80xbf16>, vector<16x80xf32> -> vector<16x80xf32>
    %146 = arith.addf %141, %145 : vector<16x80xf32>
    %c6_85 = arith.constant 6 : index
    %c0_86 = arith.constant 0 : index
    %c0_87 = arith.constant 0 : index
    %147 = vector.load %arg3[%c6_85, %c0_86, %c0_87] : memref<9x16x8xbf16, #tpu.memory_space<vmem>>, vector<1x16x8xbf16>
    %148 = vector.shape_cast %147 : vector<1x16x8xbf16> to vector<16x8xbf16>
    %149 = vector.extract_strided_slice %115 {offsets = [0, 20], sizes = [8, 80], strides = [1, 1]} : vector<8x102xbf16> to vector<8x80xbf16>
    %cst_88 = arith.constant dense<0.000000e+00> : vector<16x80xf32>
    %150 = tpu.matmul %148, %149, %cst_88 {dimension_numbers = #tpu.dot_dimension_numbers<[1], [0], [0], [1], [0, 0, 1, 1], [], []>} : vector<16x8xbf16>, vector<8x80xbf16>, vector<16x80xf32> -> vector<16x80xf32>
    %151 = arith.addf %146, %150 : vector<16x80xf32>
    %c7_89 = arith.constant 7 : index
    %c0_90 = arith.constant 0 : index
    %c0_91 = arith.constant 0 : index
    %152 = vector.load %arg3[%c7_89, %c0_90, %c0_91] : memref<9x16x8xbf16, #tpu.memory_space<vmem>>, vector<1x16x8xbf16>
    %153 = vector.shape_cast %152 : vector<1x16x8xbf16> to vector<16x8xbf16>
    %154 = vector.extract_strided_slice %115 {offsets = [0, 21], sizes = [8, 80], strides = [1, 1]} : vector<8x102xbf16> to vector<8x80xbf16>
    %cst_92 = arith.constant dense<0.000000e+00> : vector<16x80xf32>
    %155 = tpu.matmul %153, %154, %cst_92 {dimension_numbers = #tpu.dot_dimension_numbers<[1], [0], [0], [1], [0, 0, 1, 1], [], []>} : vector<16x8xbf16>, vector<8x80xbf16>, vector<16x80xf32> -> vector<16x80xf32>
    %156 = arith.addf %151, %155 : vector<16x80xf32>
    %c8_93 = arith.constant 8 : index
    %c0_94 = arith.constant 0 : index
    %c0_95 = arith.constant 0 : index
    %157 = vector.load %arg3[%c8_93, %c0_94, %c0_95] : memref<9x16x8xbf16, #tpu.memory_space<vmem>>, vector<1x16x8xbf16>
    %158 = vector.shape_cast %157 : vector<1x16x8xbf16> to vector<16x8xbf16>
    %159 = vector.extract_strided_slice %115 {offsets = [0, 22], sizes = [8, 80], strides = [1, 1]} : vector<8x102xbf16> to vector<8x80xbf16>
    %cst_96 = arith.constant dense<0.000000e+00> : vector<16x80xf32>
    %160 = tpu.matmul %158, %159, %cst_96 {dimension_numbers = #tpu.dot_dimension_numbers<[1], [0], [0], [1], [0, 0, 1, 1], [], []>} : vector<16x8xbf16>, vector<8x80xbf16>, vector<16x80xf32> -> vector<16x80xf32>
    %161 = arith.addf %156, %160 : vector<16x80xf32>
    %c24 = arith.constant 24 : index
    %c0_97 = arith.constant 0 : index
    %162 = vector.load %arg5[%c24, %c0_97] : memref<168x1xf32, #tpu.memory_space<vmem>>, vector<16x1xf32>
    %c40 = arith.constant 40 : index
    %c0_98 = arith.constant 0 : index
    %163 = vector.load %arg5[%c40, %c0_98] : memref<168x1xf32, #tpu.memory_space<vmem>>, vector<16x1xf32>
    %c56 = arith.constant 56 : index
    %c0_99 = arith.constant 0 : index
    %164 = vector.load %arg5[%c56, %c0_99] : memref<168x1xf32, #tpu.memory_space<vmem>>, vector<16x1xf32>
    %165 = vector.broadcast %162 : vector<16x1xf32> to vector<16x80xf32>
    %166 = arith.addf %161, %165 : vector<16x80xf32>
    %cst_100 = arith.constant 0.000000e+00 : f32
    %167 = vector.broadcast %cst_100 : f32 to vector<16x80xf32>
    %168 = arith.maximumf %166, %167 : vector<16x80xf32>
    %169 = vector.broadcast %163 : vector<16x1xf32> to vector<16x80xf32>
    %170 = arith.mulf %168, %169 : vector<16x80xf32>
    %171 = vector.broadcast %164 : vector<16x1xf32> to vector<16x80xf32>
    %172 = arith.addf %170, %171 : vector<16x80xf32>
    %173 = vector.extract_strided_slice %172 {offsets = [0, 0], sizes = [16, 79], strides = [1, 1]} : vector<16x80xf32> to vector<16x79xf32>
    %174 = vector.extract_strided_slice %172 {offsets = [0, 1], sizes = [16, 79], strides = [1, 1]} : vector<16x80xf32> to vector<16x79xf32>
    %175 = arith.maximumf %173, %174 : vector<16x79xf32>
    %176 = tpu.iota {dimensions = array<i32: 0>} : vector<8x4xi32>
    %177 = tpu.iota {dimensions = array<i32: 1>} : vector<8x4xi32>
    %c2_i32_101 = arith.constant 2 : i32
    %178 = vector.broadcast %c2_i32_101 : i32 to vector<8x4xi32>
    %179 = arith.muli %178, %177 : vector<8x4xi32>
    %180 = arith.cmpi eq, %176, %179 : vector<8x4xi32>
    %181 = arith.extui %180 : vector<8x4xi1> to vector<8x4xi32>
    %182 = arith.sitofp %181 : vector<8x4xi32> to vector<8x4xf32>
    %183 = vector.extract_strided_slice %175 {offsets = [0, 0], sizes = [16, 8], strides = [1, 1]} : vector<16x79xf32> to vector<16x8xf32>
    %184 = vector.extract_strided_slice %175 {offsets = [0, 10], sizes = [16, 8], strides = [1, 1]} : vector<16x79xf32> to vector<16x8xf32>
    %185 = arith.maximumf %183, %184 : vector<16x8xf32>
    %cst_102 = arith.constant dense<0.000000e+00> : vector<16x4xf32>
    %186 = tpu.matmul %185, %182, %cst_102 {dimension_numbers = #tpu.dot_dimension_numbers<[1], [0], [0], [1], [0, 0, 1, 1], [], []>} : vector<16x8xf32>, vector<8x4xf32>, vector<16x4xf32> -> vector<16x4xf32>
    %c0_103 = arith.constant 0 : index
    %c7_104 = arith.constant 7 : index
    %187 = vector.load %arg8[%c0_103, %c7_104] : memref<16x38xf32, #tpu.memory_space<vmem>>, vector<16x4xf32>
    tpu.vector_store %arg8[%c0_103, %c7_104], %186 {strides = array<i32>} : memref<16x38xf32, #tpu.memory_space<vmem>>, vector<16x4xf32>,
    %188 = vector.extract_strided_slice %175 {offsets = [0, 20], sizes = [16, 8], strides = [1, 1]} : vector<16x79xf32> to vector<16x8xf32>
    %189 = vector.extract_strided_slice %175 {offsets = [0, 30], sizes = [16, 8], strides = [1, 1]} : vector<16x79xf32> to vector<16x8xf32>
    %190 = arith.maximumf %188, %189 : vector<16x8xf32>
    %cst_105 = arith.constant dense<0.000000e+00> : vector<16x4xf32>
    %191 = tpu.matmul %190, %182, %cst_105 {dimension_numbers = #tpu.dot_dimension_numbers<[1], [0], [0], [1], [0, 0, 1, 1], [], []>} : vector<16x8xf32>, vector<8x4xf32>, vector<16x4xf32> -> vector<16x4xf32>
    %c0_106 = arith.constant 0 : index
    %c13 = arith.constant 13 : index
    %192 = vector.load %arg8[%c0_106, %c13] : memref<16x38xf32, #tpu.memory_space<vmem>>, vector<16x4xf32>
    tpu.vector_store %arg8[%c0_106, %c13], %191 {strides = array<i32>} : memref<16x38xf32, #tpu.memory_space<vmem>>, vector<16x4xf32>,
    %193 = vector.extract_strided_slice %175 {offsets = [0, 40], sizes = [16, 8], strides = [1, 1]} : vector<16x79xf32> to vector<16x8xf32>
    %194 = vector.extract_strided_slice %175 {offsets = [0, 50], sizes = [16, 8], strides = [1, 1]} : vector<16x79xf32> to vector<16x8xf32>
    %195 = arith.maximumf %193, %194 : vector<16x8xf32>
    %cst_107 = arith.constant dense<0.000000e+00> : vector<16x4xf32>
    %196 = tpu.matmul %195, %182, %cst_107 {dimension_numbers = #tpu.dot_dimension_numbers<[1], [0], [0], [1], [0, 0, 1, 1], [], []>} : vector<16x8xf32>, vector<8x4xf32>, vector<16x4xf32> -> vector<16x4xf32>
    %c0_108 = arith.constant 0 : index
    %c19 = arith.constant 19 : index
    %197 = vector.load %arg8[%c0_108, %c19] : memref<16x38xf32, #tpu.memory_space<vmem>>, vector<16x4xf32>
    tpu.vector_store %arg8[%c0_108, %c19], %196 {strides = array<i32>} : memref<16x38xf32, #tpu.memory_space<vmem>>, vector<16x4xf32>,
    %198 = vector.extract_strided_slice %175 {offsets = [0, 60], sizes = [16, 8], strides = [1, 1]} : vector<16x79xf32> to vector<16x8xf32>
    %199 = vector.extract_strided_slice %175 {offsets = [0, 70], sizes = [16, 8], strides = [1, 1]} : vector<16x79xf32> to vector<16x8xf32>
    %200 = arith.maximumf %198, %199 : vector<16x8xf32>
    %cst_109 = arith.constant dense<0.000000e+00> : vector<16x4xf32>
    %201 = tpu.matmul %200, %182, %cst_109 {dimension_numbers = #tpu.dot_dimension_numbers<[1], [0], [0], [1], [0, 0, 1, 1], [], []>} : vector<16x8xf32>, vector<8x4xf32>, vector<16x4xf32> -> vector<16x4xf32>
    %c0_110 = arith.constant 0 : index
    %c25 = arith.constant 25 : index
    %202 = vector.load %arg8[%c0_110, %c25] : memref<16x38xf32, #tpu.memory_space<vmem>>, vector<16x4xf32>
    tpu.vector_store %arg8[%c0_110, %c25], %201 {strides = array<i32>} : memref<16x38xf32, #tpu.memory_space<vmem>>, vector<16x4xf32>,
    %c0_111 = arith.constant 0 : index
    %c0_112 = arith.constant 0 : index
    %203 = vector.load %arg8[%c0_111, %c0_112] : memref<16x38xf32, #tpu.memory_space<vmem>>, vector<16x38xf32>
    %204 = arith.truncf %203 : vector<16x38xf32> to vector<16x38xbf16>
    %cst_113 = arith.constant 0.000000e+00 : f32
    %205 = vector.broadcast %cst_113 : f32 to vector<32x24xf32>
    %c0_114 = arith.constant 0 : index
    %c0_115 = arith.constant 0 : index
    %c0_116 = arith.constant 0 : index
    %206 = vector.load %arg4[%c0_114, %c0_115, %c0_116] : memref<9x32x16xbf16, #tpu.memory_space<vmem>>, vector<1x32x16xbf16>
    %207 = vector.shape_cast %206 : vector<1x32x16xbf16> to vector<32x16xbf16>
    %208 = vector.extract_strided_slice %204 {offsets = [0, 0], sizes = [16, 24], strides = [1, 1]} : vector<16x38xbf16> to vector<16x24xbf16>
    %cst_117 = arith.constant dense<0.000000e+00> : vector<32x24xf32>
    %209 = tpu.matmul %207, %208, %cst_117 {dimension_numbers = #tpu.dot_dimension_numbers<[1], [0], [0], [1], [0, 0, 1, 1], [], []>} : vector<32x16xbf16>, vector<16x24xbf16>, vector<32x24xf32> -> vector<32x24xf32>
    %210 = arith.addf %205, %209 : vector<32x24xf32>
    %c1_118 = arith.constant 1 : index
    %c0_119 = arith.constant 0 : index
    %c0_120 = arith.constant 0 : index
    %211 = vector.load %arg4[%c1_118, %c0_119, %c0_120] : memref<9x32x16xbf16, #tpu.memory_space<vmem>>, vector<1x32x16xbf16>
    %212 = vector.shape_cast %211 : vector<1x32x16xbf16> to vector<32x16xbf16>
    %213 = vector.extract_strided_slice %204 {offsets = [0, 1], sizes = [16, 24], strides = [1, 1]} : vector<16x38xbf16> to vector<16x24xbf16>
    %cst_121 = arith.constant dense<0.000000e+00> : vector<32x24xf32>
    %214 = tpu.matmul %212, %213, %cst_121 {dimension_numbers = #tpu.dot_dimension_numbers<[1], [0], [0], [1], [0, 0, 1, 1], [], []>} : vector<32x16xbf16>, vector<16x24xbf16>, vector<32x24xf32> -> vector<32x24xf32>
    %215 = arith.addf %210, %214 : vector<32x24xf32>
    %c2_122 = arith.constant 2 : index
    %c0_123 = arith.constant 0 : index
    %c0_124 = arith.constant 0 : index
    %216 = vector.load %arg4[%c2_122, %c0_123, %c0_124] : memref<9x32x16xbf16, #tpu.memory_space<vmem>>, vector<1x32x16xbf16>
    %217 = vector.shape_cast %216 : vector<1x32x16xbf16> to vector<32x16xbf16>
    %218 = vector.extract_strided_slice %204 {offsets = [0, 2], sizes = [16, 24], strides = [1, 1]} : vector<16x38xbf16> to vector<16x24xbf16>
    %cst_125 = arith.constant dense<0.000000e+00> : vector<32x24xf32>
    %219 = tpu.matmul %217, %218, %cst_125 {dimension_numbers = #tpu.dot_dimension_numbers<[1], [0], [0], [1], [0, 0, 1, 1], [], []>} : vector<32x16xbf16>, vector<16x24xbf16>, vector<32x24xf32> -> vector<32x24xf32>
    %220 = arith.addf %215, %219 : vector<32x24xf32>
    %c3_126 = arith.constant 3 : index
    %c0_127 = arith.constant 0 : index
    %c0_128 = arith.constant 0 : index
    %221 = vector.load %arg4[%c3_126, %c0_127, %c0_128] : memref<9x32x16xbf16, #tpu.memory_space<vmem>>, vector<1x32x16xbf16>
    %222 = vector.shape_cast %221 : vector<1x32x16xbf16> to vector<32x16xbf16>
    %223 = vector.extract_strided_slice %204 {offsets = [0, 6], sizes = [16, 24], strides = [1, 1]} : vector<16x38xbf16> to vector<16x24xbf16>
    %cst_129 = arith.constant dense<0.000000e+00> : vector<32x24xf32>
    %224 = tpu.matmul %222, %223, %cst_129 {dimension_numbers = #tpu.dot_dimension_numbers<[1], [0], [0], [1], [0, 0, 1, 1], [], []>} : vector<32x16xbf16>, vector<16x24xbf16>, vector<32x24xf32> -> vector<32x24xf32>
    %225 = arith.addf %220, %224 : vector<32x24xf32>
    %c4_130 = arith.constant 4 : index
    %c0_131 = arith.constant 0 : index
    %c0_132 = arith.constant 0 : index
    %226 = vector.load %arg4[%c4_130, %c0_131, %c0_132] : memref<9x32x16xbf16, #tpu.memory_space<vmem>>, vector<1x32x16xbf16>
    %227 = vector.shape_cast %226 : vector<1x32x16xbf16> to vector<32x16xbf16>
    %228 = vector.extract_strided_slice %204 {offsets = [0, 7], sizes = [16, 24], strides = [1, 1]} : vector<16x38xbf16> to vector<16x24xbf16>
    %cst_133 = arith.constant dense<0.000000e+00> : vector<32x24xf32>
    %229 = tpu.matmul %227, %228, %cst_133 {dimension_numbers = #tpu.dot_dimension_numbers<[1], [0], [0], [1], [0, 0, 1, 1], [], []>} : vector<32x16xbf16>, vector<16x24xbf16>, vector<32x24xf32> -> vector<32x24xf32>
    %230 = arith.addf %225, %229 : vector<32x24xf32>
    %c5_134 = arith.constant 5 : index
    %c0_135 = arith.constant 0 : index
    %c0_136 = arith.constant 0 : index
    %231 = vector.load %arg4[%c5_134, %c0_135, %c0_136] : memref<9x32x16xbf16, #tpu.memory_space<vmem>>, vector<1x32x16xbf16>
    %232 = vector.shape_cast %231 : vector<1x32x16xbf16> to vector<32x16xbf16>
    %233 = vector.extract_strided_slice %204 {offsets = [0, 8], sizes = [16, 24], strides = [1, 1]} : vector<16x38xbf16> to vector<16x24xbf16>
    %cst_137 = arith.constant dense<0.000000e+00> : vector<32x24xf32>
    %234 = tpu.matmul %232, %233, %cst_137 {dimension_numbers = #tpu.dot_dimension_numbers<[1], [0], [0], [1], [0, 0, 1, 1], [], []>} : vector<32x16xbf16>, vector<16x24xbf16>, vector<32x24xf32> -> vector<32x24xf32>
    %235 = arith.addf %230, %234 : vector<32x24xf32>
    %c6_138 = arith.constant 6 : index
    %c0_139 = arith.constant 0 : index
    %c0_140 = arith.constant 0 : index
    %236 = vector.load %arg4[%c6_138, %c0_139, %c0_140] : memref<9x32x16xbf16, #tpu.memory_space<vmem>>, vector<1x32x16xbf16>
    %237 = vector.shape_cast %236 : vector<1x32x16xbf16> to vector<32x16xbf16>
    %238 = vector.extract_strided_slice %204 {offsets = [0, 12], sizes = [16, 24], strides = [1, 1]} : vector<16x38xbf16> to vector<16x24xbf16>
    %cst_141 = arith.constant dense<0.000000e+00> : vector<32x24xf32>
    %239 = tpu.matmul %237, %238, %cst_141 {dimension_numbers = #tpu.dot_dimension_numbers<[1], [0], [0], [1], [0, 0, 1, 1], [], []>} : vector<32x16xbf16>, vector<16x24xbf16>, vector<32x24xf32> -> vector<32x24xf32>
    %240 = arith.addf %235, %239 : vector<32x24xf32>
    %c7_142 = arith.constant 7 : index
    %c0_143 = arith.constant 0 : index
    %c0_144 = arith.constant 0 : index
    %241 = vector.load %arg4[%c7_142, %c0_143, %c0_144] : memref<9x32x16xbf16, #tpu.memory_space<vmem>>, vector<1x32x16xbf16>
    %242 = vector.shape_cast %241 : vector<1x32x16xbf16> to vector<32x16xbf16>
    %243 = vector.extract_strided_slice %204 {offsets = [0, 13], sizes = [16, 24], strides = [1, 1]} : vector<16x38xbf16> to vector<16x24xbf16>
    %cst_145 = arith.constant dense<0.000000e+00> : vector<32x24xf32>
    %244 = tpu.matmul %242, %243, %cst_145 {dimension_numbers = #tpu.dot_dimension_numbers<[1], [0], [0], [1], [0, 0, 1, 1], [], []>} : vector<32x16xbf16>, vector<16x24xbf16>, vector<32x24xf32> -> vector<32x24xf32>
    %245 = arith.addf %240, %244 : vector<32x24xf32>
    %c8_146 = arith.constant 8 : index
    %c0_147 = arith.constant 0 : index
    %c0_148 = arith.constant 0 : index
    %246 = vector.load %arg4[%c8_146, %c0_147, %c0_148] : memref<9x32x16xbf16, #tpu.memory_space<vmem>>, vector<1x32x16xbf16>
    %247 = vector.shape_cast %246 : vector<1x32x16xbf16> to vector<32x16xbf16>
    %248 = vector.extract_strided_slice %204 {offsets = [0, 14], sizes = [16, 24], strides = [1, 1]} : vector<16x38xbf16> to vector<16x24xbf16>
    %cst_149 = arith.constant dense<0.000000e+00> : vector<32x24xf32>
    %249 = tpu.matmul %247, %248, %cst_149 {dimension_numbers = #tpu.dot_dimension_numbers<[1], [0], [0], [1], [0, 0, 1, 1], [], []>} : vector<32x16xbf16>, vector<16x24xbf16>, vector<32x24xf32> -> vector<32x24xf32>
    %250 = arith.addf %245, %249 : vector<32x24xf32>
    %c72 = arith.constant 72 : index
    %c0_150 = arith.constant 0 : index
    %251 = vector.load %arg5[%c72, %c0_150] : memref<168x1xf32, #tpu.memory_space<vmem>>, vector<32x1xf32>
    %c104 = arith.constant 104 : index
    %c0_151 = arith.constant 0 : index
    %252 = vector.load %arg5[%c104, %c0_151] : memref<168x1xf32, #tpu.memory_space<vmem>>, vector<32x1xf32>
    %c136 = arith.constant 136 : index
    %c0_152 = arith.constant 0 : index
    %253 = vector.load %arg5[%c136, %c0_152] : memref<168x1xf32, #tpu.memory_space<vmem>>, vector<32x1xf32>
    %254 = vector.broadcast %251 : vector<32x1xf32> to vector<32x24xf32>
    %255 = arith.addf %250, %254 : vector<32x24xf32>
    %cst_153 = arith.constant 0.000000e+00 : f32
    %256 = vector.broadcast %cst_153 : f32 to vector<32x24xf32>
    %257 = arith.maximumf %255, %256 : vector<32x24xf32>
    %258 = vector.broadcast %252 : vector<32x1xf32> to vector<32x24xf32>
    %259 = arith.mulf %257, %258 : vector<32x24xf32>
    %260 = vector.broadcast %253 : vector<32x1xf32> to vector<32x24xf32>
    %261 = arith.addf %259, %260 : vector<32x24xf32>
    %262 = vector.extract_strided_slice %261 {offsets = [0, 0], sizes = [32, 23], strides = [1, 1]} : vector<32x24xf32> to vector<32x23xf32>
    %263 = vector.extract_strided_slice %261 {offsets = [0, 1], sizes = [32, 23], strides = [1, 1]} : vector<32x24xf32> to vector<32x23xf32>
    %264 = arith.maximumf %262, %263 : vector<32x23xf32>
    %265 = tpu.iota {dimensions = array<i32: 0>} : vector<4x2xi32>
    %266 = tpu.iota {dimensions = array<i32: 1>} : vector<4x2xi32>
    %c2_i32_154 = arith.constant 2 : i32
    %267 = vector.broadcast %c2_i32_154 : i32 to vector<4x2xi32>
    %268 = arith.muli %267, %266 : vector<4x2xi32>
    %269 = arith.cmpi eq, %265, %268 : vector<4x2xi32>
    %270 = arith.extui %269 : vector<4x2xi1> to vector<4x2xi32>
    %271 = arith.sitofp %270 : vector<4x2xi32> to vector<4x2xf32>
    %272 = vector.extract_strided_slice %264 {offsets = [0, 0], sizes = [32, 4], strides = [1, 1]} : vector<32x23xf32> to vector<32x4xf32>
    %273 = vector.extract_strided_slice %264 {offsets = [0, 6], sizes = [32, 4], strides = [1, 1]} : vector<32x23xf32> to vector<32x4xf32>
    %274 = arith.maximumf %272, %273 : vector<32x4xf32>
    %cst_155 = arith.constant dense<0.000000e+00> : vector<32x2xf32>
    %275 = tpu.matmul %274, %271, %cst_155 {dimension_numbers = #tpu.dot_dimension_numbers<[1], [0], [0], [1], [0, 0, 1, 1], [], []>} : vector<32x4xf32>, vector<4x2xf32>, vector<32x2xf32> -> vector<32x2xf32>
    %c0_156 = arith.constant 0 : index
    %c0_157 = arith.constant 0 : index
    %c0_158 = arith.constant 0 : index
    %276 = vector.load %arg6[%c0_156, %c0_157, %c0_158] : memref<1x32x4xf32, #tpu.memory_space<vmem>>, vector<1x32x2xf32>
    %277 = vector.shape_cast %276 : vector<1x32x2xf32> to vector<32x2xf32>
    %278 = vector.shape_cast %275 : vector<32x2xf32> to vector<1x32x2xf32>
    tpu.vector_store %arg6[%c0_156, %c0_157, %c0_158], %278 {strides = array<i32>} : memref<1x32x4xf32, #tpu.memory_space<vmem>>, vector<1x32x2xf32>,
    %279 = vector.extract_strided_slice %264 {offsets = [0, 12], sizes = [32, 4], strides = [1, 1]} : vector<32x23xf32> to vector<32x4xf32>
    %280 = vector.extract_strided_slice %264 {offsets = [0, 18], sizes = [32, 4], strides = [1, 1]} : vector<32x23xf32> to vector<32x4xf32>
    %281 = arith.maximumf %279, %280 : vector<32x4xf32>
    %cst_159 = arith.constant dense<0.000000e+00> : vector<32x2xf32>
    %282 = tpu.matmul %281, %271, %cst_159 {dimension_numbers = #tpu.dot_dimension_numbers<[1], [0], [0], [1], [0, 0, 1, 1], [], []>} : vector<32x4xf32>, vector<4x2xf32>, vector<32x2xf32> -> vector<32x2xf32>
    %c0_160 = arith.constant 0 : index
    %c0_161 = arith.constant 0 : index
    %c2_162 = arith.constant 2 : index
    %283 = vector.load %arg6[%c0_160, %c0_161, %c2_162] : memref<1x32x4xf32, #tpu.memory_space<vmem>>, vector<1x32x2xf32>
    %284 = vector.shape_cast %283 : vector<1x32x2xf32> to vector<32x2xf32>
    %285 = vector.shape_cast %282 : vector<32x2xf32> to vector<1x32x2xf32>
    tpu.vector_store %arg6[%c0_160, %c0_161, %c2_162], %285 {strides = array<i32>} : memref<1x32x4xf32, #tpu.memory_space<vmem>>, vector<1x32x2xf32>,
    return
  }
  func.func @transform_0(%arg0: i32) -> (i32, i32, i32) {
    %c0_i32 = arith.constant 0 : i32
    %c0_i32_0 = arith.constant 0 : i32
    %c0_i32_1 = arith.constant 0 : i32
    return %arg0, %c0_i32, %c0_i32_0 : i32, i32, i32
  }
  func.func @transform_1(%arg0: i32) -> (i32, i32, i32) {
    %c0_i32 = arith.constant 0 : i32
    %c0_i32_0 = arith.constant 0 : i32
    %c0_i32_1 = arith.constant 0 : i32
    %c0_i32_2 = arith.constant 0 : i32
    return %c0_i32, %c0_i32_0, %c0_i32_1 : i32, i32, i32
  }
  func.func @transform_2(%arg0: i32) -> (i32, i32, i32) {
    %c0_i32 = arith.constant 0 : i32
    %c0_i32_0 = arith.constant 0 : i32
    %c0_i32_1 = arith.constant 0 : i32
    %c0_i32_2 = arith.constant 0 : i32
    return %c0_i32, %c0_i32_0, %c0_i32_1 : i32, i32, i32
  }
  func.func @transform_3(%arg0: i32) -> (i32, i32, i32) {
    %c0_i32 = arith.constant 0 : i32
    %c0_i32_0 = arith.constant 0 : i32
    %c0_i32_1 = arith.constant 0 : i32
    %c0_i32_2 = arith.constant 0 : i32
    return %c0_i32, %c0_i32_0, %c0_i32_1 : i32, i32, i32
  }
  func.func @transform_4(%arg0: i32) -> (i32, i32) {
    %c0_i32 = arith.constant 0 : i32
    %c0_i32_0 = arith.constant 0 : i32
    %c0_i32_1 = arith.constant 0 : i32
    return %c0_i32, %c0_i32_0 : i32, i32
  }
  func.func @transform_5(%arg0: i32) -> (i32, i32, i32) {
    %c0_i32 = arith.constant 0 : i32
    %c0_i32_0 = arith.constant 0 : i32
    %c0_i32_1 = arith.constant 0 : i32
    return %arg0, %c0_i32, %c0_i32_0 : i32, i32, i32
  }
}

</mosaic_0001>

<bundles_post_ra>
// kernel: tpu_custom_call.1
= control target key start
LH: loop header
LB: loop body
LE: loop exit
PB: predicated region body
PF: predicated region fallthrough
CT: control target
= control target key end

     0   :  { %s4762_s18 = smov 0   ;;  %s5315_s0 = inlined_call_operand.vmem [shape: f32[2,4,326], index: 0, kind: input, shape index: {}]   ;;  %s5316_s1 = inlined_call_operand.vmem [shape: bf16[9,8,4], index: 1, kind: input, shape index: {}]   ;;  %s5317_s2 = inlined_call_operand.vmem [shape: bf16[9,16,8], index: 2, kind: input, shape index: {}]   ;;  %s5318_s3 = inlined_call_operand.vmem [shape: bf16[9,32,16], index: 3, kind: input, shape index: {}]   ;;  %s5319_s4 = inlined_call_operand.vmem [shape: f32[168,1], index: 4, kind: input, shape index: {}]   ;;  %s5320_s5 = inlined_call_operand.vmem [shape: f32[2,32,4], index: 5, kind: output, shape index: {}]  }
   0x1 LB: > { %s3980_s19 = sadd.s32 4294967295, %s4685_s18   ;;  %p3984_p0 = scmp.ge.s32.totalorder %s4685_s18, 1  ;;  %s4685_s18 = sphi %s4762_s18, %s15_s18  }
   0x2   : > { %p187_p1 = scmp.lt.s32.totalorder %s4685_s18, 3 }
   0x4   : > { %p188_p2 = pnand %p3984_p0, %p187_p1 }
   0x5   : > { %p215_p3 = scmp.lt.s32.totalorder (!%p188_p2), %s3980_s19, 1  ;;  %v4687_v0 = vmov (!%p188_p2), 0   ;;  %s4688_s24 = smov (!%p188_p2), 127   ;;  %v1191_v7 = vld [vmem:[%s5319_s4] sm:$0xff] (!%p188_p2)  ;;  %v1192_v8 = vld [vmem:[%s5319_s4 + $0x8] sm:$0xff] (!%p188_p2)  ;;  %v1193_v9 = vld [vmem:[%s5319_s4 + $0x10] sm:$0xff] (!%p188_p2) }
   0x6   : > { %191 = sbr.rel (%p188_p2) target bundleno = 3341 (0xd0d), region = 40  ;;  %300 = vmatprep.mubr.bf16.mxu1 (!%p188_p2), %v4687_v0  ;;  %604 = vmatprep.mubr.bf16.mxu0 (!%p188_p2), %v4687_v0  ;;  %s4689_s25 = smov (!%p188_p2), 126   ;;  %vm251_vm0 = vcmask (!%p188_p2), 1039360   ;;  %vm258_vm1 = vcmask (!%p188_p2), 1041408   ;;  %v3988_v17 = vld [vmem:[%s5316_s1 + $0x4] sm:$0xf] (!%p188_p2) }
   0x7   : > { %4649 = vset.pattern.permute.xlu0 (!%p188_p2), %v4687_v0  ;;  %4650 = vset.pattern.permute.xlu1 (!%p188_p2), %v4687_v0  ;;  %s4690_s26 = smov (!%p188_p2), 110   ;;  %s4691_s27 = smov (!%p188_p2), 109   ;;  %vm254_vm2 = vcmask (!%p188_p2), 31744   ;;  %v4696_v19 = vmov (!%p188_p2), 0.0   ;;  %vm557_vm3 = vcmask (!%p188_p2), 900096   ;;  %vm4697_vm4 = vmmov (!%p188_p2), 0  }
   0x8   : > { %s4692_s28 = smov (!%p188_p2), 108   ;;  %s4693_s29 = smov (!%p188_p2), 92   ;;  %vm664_vm5 = vcmask (!%p188_p2), 891904   ;;  %v4852_v30 = vld [vmem:[%s5316_s1 + $0xc] sm:$0xf] (!%p188_p2)  ;;  %vm450_vm6 = vcmask (!%p188_p2), 1031168  }
   0x9   : > { %s4694_s30 = smov (!%p188_p2), 91   ;;  %s4695_s6 = smov (!%p188_p2), 90   ;;  %vm771_vm7 = vcmask (!%p188_p2), 883712   ;;  %v239_v36 = vld [vmem:[%s5316_s1] sm:$0xf] (!%p188_p2)  ;;  %vm878_vm8 = vcmask (!%p188_p2), 752640  }
   0xa   : > { %v4876_v42 = vld [vmem:[%s5316_s1 + $0x10] sm:$0xf] (!%p188_p2)  ;;  %v4007_v53 = vld [vmem:[%s5316_s1 + $0x14] sm:$0xf] (!%p188_p2)  ;;  %vm985_vm9 = vcmask (!%p188_p2), 744448   ;;  %vm1092_vm10 = vcmask (!%p188_p2), 736256  }
   0xb   : > { %v3995_v57 = vld [vmem:[%s5316_s1 + $0x8] sm:$0xf] (!%p188_p2)  ;;  %v4011_v63 = vld [vmem:[%s5316_s1 + $0x18] sm:$0xf] (!%p188_p2)  ;;  %vm1256_vm14 = vcmask (!%p188_p2), 130048   ;;  %s4700_s13 = smov (!%p188_p2), 56  }
   0xc   : > { %s4702_s14 = smov (!%p188_p2), 20   ;;  %s4704_s15 = smov (!%p188_p2), 76   ;;  %vm226_vm15 = vcmask (!%p188_p2), 834560  }
   0xd   : > { %s5326_s19 = smov (!%p215_p3, %s3980_s19), 1  ;;  %s4705_s16 = smov 4   ;;  %227 = vst.msk [vmem:[#allocation2] sm:$0xff] %vm226_vm15, %v4696_v19  ;;  %vm2694_vm15 = vcmask 138344  }
   0xe   : > { %s4595_s20 = smul.u32 12, %s5326_s19  ;;  %s4706_s17 = smov 11  }
   0xf   : > { %s4708_s21 = smov 21   ;;  %s4709_s22 = smov 51  }
  0x10   : > { %s219_s23 = scalar_lea.vmem %s5315_s0, %s4595_s20  ;;  %s4707_s20 = smov 31  }
  0x11   : > { %v231_v1 = vld [vmem:[%s219_s23] sm:$0xff]  ;;  %v232_v2 = vld [vmem:[%s219_s23 + $0x8] sm:$0xf]  ;;  %s4710_s23 = smov 41   ;;  %s4714_s9 = smov 117  }
  0x12   : > { %v4780_v3 = vpack.c.bf16 %v231_v1, %v231_v1  ;;  %v4782_v4 = vpack.c.bf16 %v232_v2, %v232_v2  ;;  %v234_v5 = vcombine.high %v231_v1, %v231_v1  ;;  %s4715_s10 = smov 118   ;;  %s4716_s11 = smov 116  }
  0x13   : > { %s4717_s12 = smov 106   ;;  %s4725_s7 = smov 25  }
  0x14   : > { %245 = vrot.lane.b32.xlu0 %v4780_v3, %s4688_s24  ;;  %249 = vrot.lane.b32.xlu1 %v4782_v4, %s4688_s24  ;;  %v237_v6 = vpack.c.bf16 %v234_v5, %v234_v5  ;;  %v353_v26 = vsel %vm258_vm1, %v4780_v3, 0  ;;  %v359_v37 = vsel %vm258_vm1, %v4782_v4, 0 }
  0x18   : > { %247 = vrot.lane.b32.xlu0 %v237_v6, %s4688_s24  ;;  %444 = vrot.lane.b32.xlu1 %v4780_v3, %s4689_s25 }
  0x1c   : > { %446 = vrot.lane.b32.xlu0 %v237_v6, %s4689_s25  ;;  %448 = vrot.lane.b32.xlu1 %v4782_v4, %s4689_s25 }
  0x20   : > { %551 = vrot.lane.b32.xlu0 %v4780_v3, %s4690_s26  ;;  %553 = vrot.lane.b32.xlu1 %v237_v6, %s4690_s26 }
  0x24   : > { %555 = vrot.lane.b32.xlu0 %v4782_v4, %s4690_s26  ;;  %658 = vrot.lane.b32.xlu1 %v4780_v3, %s4691_s27 }
  0x28   : > { %662 = vrot.lane.b32.xlu1 %v4782_v4, %s4691_s27  ;;  %660 = vrot.lane.b32.xlu0 %v237_v6, %s4691_s27  ;;  %s4711_s27 = smov 71  }
  0x2c   : > { %765 = vrot.lane.b32.xlu0 %v4780_v3, %s4692_s28  ;;  %767 = vrot.lane.b32.xlu1 %v237_v6, %s4692_s28 }
  0x30   : > { %769 = vrot.lane.b32.xlu0 %v4782_v4, %s4692_s28  ;;  %872 = vrot.lane.b32.xlu1 %v4780_v3, %s4693_s29 }
  0x34   : > { %876 = vrot.lane.b32.xlu1 %v4782_v4, %s4693_s29  ;;  %874 = vrot.lane.b32.xlu0 %v237_v6, %s4693_s29 }
  0x38   : > { %979 = vrot.lane.b32.xlu0 %v4780_v3, %s4694_s30  ;;  %981 = vrot.lane.b32.xlu1 %v237_v6, %s4694_s30 }
  0x3c   : > { %983 = vrot.lane.b32.xlu0 %v4782_v4, %s4694_s30  ;;  %1086 = vrot.lane.b32.xlu1 %v4780_v3, %s4695_s6  ;;  %s4712_s30 = smov 61  }
  0x40   : > { %1090 = vrot.lane.b32.xlu1 %v4782_v4, %s4695_s6  ;;  %1088 = vrot.lane.b32.xlu0 %v237_v6, %s4695_s6  ;;  %s4713_s6 = smov 81  }
  0x44   : > { %1196 = vperm.xlu0 %4649, %v1191_v7   ;;  %1207 = vperm.xlu1 %4650, %v1192_v8   ;;  %v4015_v7 = vld [vmem:[%s5316_s1 + $0x1c] sm:$0xf] }
  0x48   : > { %1215 = vperm.xlu1 %4650, %v1193_v9  }
  0x86   : > { %v246_v10 = vpop.permute.xlu0 %245  ;;  %v250_v11 = vpop.permute.xlu1 %249 }
  0x87   : > { %v266_v21 = vsel %vm258_vm1, %v250_v11, 0 }
  0x8a   : > { %v248_v12 = vpop.permute.xlu0 %247  ;;  %v445_v13 = vpop.permute.xlu1 %444 }
  0x8b   : > { %v253_v14 = vsel %vm251_vm0, %v248_v12, %v250_v11  ;;  %v252_v15 = vsel %vm251_vm0, %v246_v10, %v248_v12  ;;  %v4019_v10 = vld [vmem:[%s5316_s1 + $0x20] sm:$0xf] }
  0x8c   : > { %3989 = vmatprep.subr.msk.bf16.mxu1 %vm258_vm1, %v253_v14  ;;  %v260_v16 = vsel %vm258_vm1, %v252_v15, 0 }
  0x8d   : > { %269 = vmatpush1.bf16.msra.mxu1 %v260_v16 }
  0x8e   : > { %v447_v18 = vpop.permute.xlu0 %446  ;;  %4285 = vmatprep.subr.bf16.mxu1 %v4696_v19  ;;  %v4832_v20 = vpop.permute.xlu1 %448 }
  0x8f   : > { %v452_v41 = vsel %vm450_vm6, %v447_v18, %v4832_v20  ;;  %v451_v46 = vsel %vm450_vm6, %v445_v13, %v447_v18  ;;  %v463_v62 = vsel %vm258_vm1, %v4832_v20, 0  ;;  %vm1665_vm6 = vcmask 482712  }
  0x90   : > { %3990 = vmatmul.mubr.msk.bf16.vlgmr.msra.gmra.mrb[0].mxu1 %vm254_vm2, %v3988_v17  ;;  %v457_v48 = vsel %vm258_vm1, %v451_v46, 0 }
  0x91   : > { %4286 = vmatpush3.bf16.msra.mxu1 %v266_v21  ;;  %4287 = vmatprep.mubr.msk.bf16.mxu1 %vm4697_vm4, %v4696_v19 }
  0x92   : > { %v552_v22 = vpop.permute.xlu0 %551  ;;  %v554_v23 = vpop.permute.xlu1 %553  ;;  %3992 = vmatprep.subr.msk.bf16.mxu1 %vm258_vm1, %v237_v6 }
  0x93   : > { %v558_v24 = vsel %vm557_vm3, %v552_v22, %v554_v23 }
  0x94   : > { %v564_v27 = vsel %vm258_vm1, %v558_v24, 0 }
  0x96   : > { %v4840_v25 = vpop.permute.xlu0 %555  ;;  %v659_v28 = vpop.permute.xlu1 %658 }
  0x97   : > { %v559_v29 = vsel %vm557_vm3, %v554_v23, %v4840_v25  ;;  %v570_v5 = vsel %vm258_vm1, %v4840_v25, 0 }
  0x98   : > { %4288 = vmatmul.mubr.msk.bf16.vlgmr.msra.gmra.mrb[4].mxu1 %vm254_vm2, %v3988_v17  ;;  %4000 = vmatprep.subr.msk.bf16.mxu0 %vm258_vm1, %v559_v29 }
  0x99   : > { %362 = vmatpush1.bf16.msra.mxu1 %v353_v26  ;;  %573 = vmatpush1.bf16.msra.mxu0 %v564_v27 }
  0x9a   : > { %v4854_v31 = vpop.permute.xlu1 %662  ;;  %v661_v32 = vpop.permute.xlu0 %660  ;;  %393 = vmatprep.mubr.bf16.mxu1 %v4687_v0  ;;  %4291 = vmatprep.subr.bf16.mxu1 %v4696_v19 }
  0x9b   : > { %v665_v33 = vsel %vm664_vm5, %v659_v28, %v661_v32  ;;  %v666_v34 = vsel %vm664_vm5, %v661_v32, %v4854_v31  ;;  %v677_v9 = vsel %vm258_vm1, %v4854_v31, 0  ;;  %vm1582_vm5 = vcmask 400712  }
  0x9c   : > { %4001 = vmatmul.mubr.msk.bf16.vlgmr.msra.gmra.mrb[0].mxu0 %vm254_vm2, %v4852_v30  ;;  %4004 = vmatprep.subr.msk.bf16.mxu0 %vm258_vm1, %v666_v34  ;;  %v671_v35 = vsel %vm258_vm1, %v665_v33, 0 }
  0x9d   : > { %680 = vmatpush1.bf16.msra.mxu0 %v671_v35  ;;  %711 = vmatprep.mubr.bf16.mxu0 %v4687_v0 }
  0x9e   : > { %v766_v38 = vpop.permute.xlu0 %765  ;;  %v768_v39 = vpop.permute.xlu1 %767 }
  0x9f   : > { %v772_v40 = vsel %vm771_vm7, %v766_v38, %v768_v39 }
  0xa0   : > { %3993 = vmatmul.mubr.msk.bf16.vlgmr.msra.gmra.mrb[8].mxu1 %vm254_vm2, %v239_v36  ;;  %v778_v44 = vsel %vm258_vm1, %v772_v40, 0 }
  0xa1   : > { %4292 = vmatpush3.bf16.msra.mxu1 %v359_v37  ;;  %4293 = vmatprep.mubr.msk.bf16.mxu1 %vm4697_vm4, %v4696_v19 }
  0xa2   : > { %v4880_v43 = vpop.permute.xlu0 %769  ;;  %3996 = vmatprep.subr.msk.bf16.mxu1 %vm258_vm1, %v452_v41  ;;  %v873_v45 = vpop.permute.xlu1 %872 }
  0xa3   : > { %v773_v47 = vsel %vm771_vm7, %v768_v39, %v4880_v43  ;;  %vm1745_vm7 = vcmask 564712  }
  0xa4   : > { %4005 = vmatmul.mubr.msk.bf16.vlgmr.msra.gmra.mrb[4].mxu0 %vm254_vm2, %v4876_v42  ;;  %4008 = vmatprep.subr.msk.bf16.mxu0 %vm258_vm1, %v773_v47 }
  0xa5   : > { %787 = vmatpush1.bf16.msra.mxu0 %v778_v44  ;;  %818 = vmatprep.mubr.bf16.mxu0 %v4687_v0 }
  0xa6   : > { %v877_v49 = vpop.permute.xlu1 %876  ;;  %v875_v50 = vpop.permute.xlu0 %874 }
  0xa7   : > { %v879_v51 = vsel %vm878_vm8, %v873_v45, %v875_v50  ;;  %v880_v52 = vsel %vm878_vm8, %v875_v50, %v877_v49  ;;  %v891_v11 = vsel %vm258_vm1, %v877_v49, 0  ;;  %vm1825_vm8 = vcmask 646712  }
  0xa8   : > { %4294 = vmatmul.mubr.msk.bf16.vlgmr.msra.gmra.mrb[12].mxu1 %vm254_vm2, %v239_v36  ;;  %4012 = vmatprep.subr.msk.bf16.mxu0 %vm258_vm1, %v880_v52  ;;  %v885_v54 = vsel %vm258_vm1, %v879_v51, 0 }
  0xa9   : > { %466 = vmatpush1.bf16.msra.mxu1 %v457_v48  ;;  %497 = vmatprep.mubr.bf16.mxu1 %v4687_v0 }
  0xaa   : > { %4297 = vmatprep.subr.bf16.mxu1 %v4696_v19  ;;  %v980_v55 = vpop.permute.xlu0 %979  ;;  %v982_v56 = vpop.permute.xlu1 %981 }
  0xab   : > { %v986_v60 = vsel %vm985_vm9, %v980_v55, %v982_v56 }
  0xac   : > { %4009 = vmatmul.mubr.msk.bf16.vlgmr.msra.gmra.mrb[8].mxu0 %vm254_vm2, %v4007_v53  ;;  %v992_v1 = vsel %vm258_vm1, %v986_v60, 0 }
  0xad   : > { %894 = vmatpush1.bf16.msra.mxu0 %v885_v54  ;;  %925 = vmatprep.mubr.bf16.mxu0 %v4687_v0 }
  0xae   : > { %v984_v58 = vpop.permute.xlu0 %983  ;;  %v1087_v59 = vpop.permute.xlu1 %1086 }
  0xaf   : > { %v987_v61 = vsel %vm985_vm9, %v982_v56, %v984_v58  ;;  %v998_v12 = vsel %vm258_vm1, %v984_v58, 0  ;;  %vm1916_vm9 = vcmask 728712  }
  0xb0   : > { %3997 = vmatmul.mubr.msk.bf16.vlgmr.msra.gmra.mrb[16].mxu1 %vm254_vm2, %v3995_v57  ;;  %4016 = vmatprep.subr.msk.bf16.mxu0 %vm258_vm1, %v987_v61 }
  0xb1   : > { %4298 = vmatpush3.bf16.msra.mxu1 %v463_v62  ;;  %4299 = vmatprep.mubr.msk.bf16.mxu1 %vm4697_vm4, %v4696_v19 }
  0xb2   : > { %4303 = vmatprep.subr.bf16.mxu1 %v4696_v19  ;;  %v1091_v2 = vpop.permute.xlu1 %1090  ;;  %v1089_v3 = vpop.permute.xlu0 %1088 }
  0xb3   : > { %v1094_v4 = vsel %vm1092_vm10, %v1089_v3, %v1091_v2  ;;  %v1093_v6 = vsel %vm1092_vm10, %v1087_v59, %v1089_v3  ;;  %v1105_v13 = vsel %vm258_vm1, %v1091_v2, 0  ;;  %vm1937_vm10 = vcmask 1043456  }
  0xb4   : > { %4013 = vmatmul.mubr.msk.bf16.vlgmr.msra.gmra.mrb[12].mxu0 %vm254_vm2, %v4011_v63  ;;  %v1099_v8 = vsel %vm258_vm1, %v1093_v6, 0 }
  0xb5   : > { %1001 = vmatpush1.bf16.msra.mxu0 %v992_v1  ;;  %1032 = vmatprep.mubr.bf16.mxu0 %v4687_v0 }
  0xb6   : > { %4020 = vmatprep.subr.msk.bf16.mxu0 %vm258_vm1, %v1094_v4 }
  0xb8   : > { %4300 = vmatmul.mubr.msk.bf16.vlgmr.msra.gmra.mrb[20].mxu1 %vm254_vm2, %v3995_v57 }
  0xb9   : > { %4304 = vmatpush3.bf16.msra.mxu1 %v570_v5  ;;  %4305 = vmatprep.mubr.msk.bf16.mxu1 %vm4697_vm4, %v4696_v19 }
  0xba   : > { %4309 = vmatprep.subr.bf16.mxu1 %v4696_v19 }
  0xbc   : > { %4017 = vmatmul.mubr.msk.bf16.vlgmr.msra.gmra.mrb[16].mxu0 %vm254_vm2, %v4015_v7 }
  0xbd   : > { %1108 = vmatpush1.bf16.msra.mxu0 %v1099_v8  ;;  %1139 = vmatprep.mubr.bf16.mxu0 %v4687_v0  ;;  %v784_v0 = vsel %vm258_vm1, %v4880_v43, 0  ;;  %vm1414_vm1 = vcmask 236712  }
  0xc0   : > { %4306 = vmatmul.mubr.msk.bf16.vlgmr.msra.gmra.mrb[24].mxu1 %vm254_vm2, %v4852_v30 }
  0xc1   : > { %4310 = vmatpush3.bf16.msra.mxu1 %v677_v9  ;;  %4311 = vmatprep.mubr.msk.bf16.mxu1 %vm4697_vm4, %v4696_v19 }
  0xc2   : > { %4315 = vmatprep.subr.bf16.mxu1 %v4696_v19 }
  0xc4   : > { %4021 = vmatmul.mubr.msk.bf16.vlgmr.msra.gmra.mrb[20].mxu0 %vm254_vm2, %v4019_v10 }
  0xc5   : > { %4357 = vmatprep.mubr.msk.f32.mxu0 %vm4697_vm4, %v4696_v19 }
  0xc8   : > { %4312 = vmatmul.mubr.msk.bf16.vlgmr.msra.gmra.mrb[28].mxu1 %vm254_vm2, %v4876_v42 }
  0xc9   : > { %4316 = vmatpush3.bf16.msra.mxu1 %v784_v0  ;;  %4317 = vmatprep.mubr.msk.bf16.mxu1 %vm4697_vm4, %v4696_v19 }
  0xca   : > { %4321 = vmatprep.subr.bf16.mxu1 %v4696_v19 }
  0xd0   : > { %4318 = vmatmul.mubr.msk.bf16.vlgmr.msra.gmra.mrb[32].mxu1 %vm254_vm2, %v4007_v53 }
  0xd1   : > { %4322 = vmatpush3.bf16.msra.mxu1 %v891_v11  ;;  %4323 = vmatprep.mubr.msk.bf16.mxu1 %vm4697_vm4, %v4696_v19 }
  0xd2   : > { %4327 = vmatprep.subr.bf16.mxu1 %v4696_v19 }
  0xd8   : > { %4324 = vmatmul.mubr.msk.bf16.vlgmr.msra.gmra.mrb[36].mxu1 %vm254_vm2, %v4011_v63 }
  0xd9   : > { %4328 = vmatpush3.bf16.msra.mxu1 %v998_v12  ;;  %4329 = vmatprep.mubr.msk.bf16.mxu1 %vm4697_vm4, %v4696_v19 }
  0xda   : > { %4333 = vmatprep.subr.bf16.mxu1 %v4696_v19 }
  0xe0   : > { %4330 = vmatmul.mubr.msk.bf16.vlgmr.msra.gmra.mrb[40].mxu1 %vm254_vm2, %v4015_v7 }
  0xe1   : > { %4334 = vmatpush3.bf16.msra.mxu1 %v1105_v13  ;;  %4335 = vmatprep.mubr.msk.bf16.mxu1 %vm4697_vm4, %v4696_v19 }
  0xe8   : > { %4336 = vmatmul.mubr.msk.bf16.vlgmr.msra.gmra.mrb[44].mxu1 %vm254_vm2, %v4019_v10 }
  0xe9   : > { %4343 = vmatprep.mubr.msk.f32.mxu1 %vm4697_vm4, %v4696_v19 }
 0x163   : > { %v302_v14 = vpop.f32.mrb[0].mxu1 }
 0x164   : > { %v304_v15 = vpop.f32.mrb[1].mxu1 }
 0x165   : > { %v306_v16 = vpop.f32.mrb[2].mxu1 }
 0x166   : > { %v307_v17 = vpop.f32.mrb[3].mxu1  ;;  %v1197_v16 = vpop.permute.xlu0 %1196 }
 0x16b   : > { %v343_v18 = vpop.f32.mrb[4].mxu1 }
 0x16c   : > { %v4289_v20 = vpop.f32.mrb[5].mxu1 }
 0x16d   : > { %v346_v21 = vpop.f32.mrb[6].mxu1 }
 0x16e   : > { %v4290_v22 = vpop.f32.mrb[7].mxu1 }
 0x16f   : > { %v606_v23 = vpop.f32.mrb[0].mxu0 }
 0x170   : > { %v608_v24 = vpop.f32.mrb[1].mxu0 }
 0x171   : > { %v610_v25 = vpop.f32.mrb[2].mxu0 }
 0x172   : > { %v611_v26 = vpop.f32.mrb[3].mxu0 }
 0x173   : > { %v395_v27 = vpop.f32.mrb[8].mxu1 }
 0x174   : > { %v396_v28 = vadd.f32 %v395_v27, %v302_v14  ;;  %v397_v29 = vpop.f32.mrb[9].mxu1 }
 0x175   : > { %v398_v30 = vadd.f32 %v397_v29, %v304_v15  ;;  %v399_v31 = vpop.f32.mrb[10].mxu1 }
 0x176   : > { %v400_v32 = vpop.f32.mrb[11].mxu1 }
 0x177   : > { %v713_v33 = vpop.f32.mrb[4].mxu0 }
 0x178   : > { %v715_v34 = vpop.f32.mrb[5].mxu0 }
 0x179   : > { %v717_v35 = vpop.f32.mrb[6].mxu0 }
 0x17a   : > { %v718_v36 = vpop.f32.mrb[7].mxu0 }
 0x17b   : > { %v436_v37 = vpop.f32.mrb[12].mxu1 }
 0x17c   : > { %v437_v38 = vadd.f32 %v436_v37, %v343_v18  ;;  %v4295_v39 = vpop.f32.mrb[13].mxu1  ;;  %v1208_v18 = vpop.permute.xlu1 %1207 }
 0x17d   : > { %v439_v40 = vpop.f32.mrb[14].mxu1 }
 0x17e   : > { %v4296_v41 = vpop.f32.mrb[15].mxu1 }
 0x17f   : > { %v820_v42 = vpop.f32.mrb[8].mxu0 }
 0x180   : > { %v822_v43 = vpop.f32.mrb[9].mxu0 }
 0x181   : > { %v824_v44 = vpop.f32.mrb[10].mxu0 }
 0x182   : > { %v825_v45 = vpop.f32.mrb[11].mxu0 }
 0x183   : > { %v499_v46 = vpop.f32.mrb[16].mxu1 }
 0x184   : > { %v546_v47 = vadd.f32 %v499_v46, %v396_v28  ;;  %v501_v48 = vpop.f32.mrb[17].mxu1 }
 0x185   : > { %v547_v49 = vadd.f32 %v501_v48, %v398_v30  ;;  %v503_v50 = vpop.f32.mrb[18].mxu1 }
 0x186   : > { %v653_v51 = vadd.f32 %v606_v23, %v546_v47  ;;  %v504_v52 = vpop.f32.mrb[19].mxu1 }
 0x187   : > { %v654_v53 = vadd.f32 %v608_v24, %v547_v49  ;;  %v927_v54 = vpop.f32.mrb[12].mxu0 }
 0x188   : > { %v760_v55 = vadd.f32 %v713_v33, %v653_v51  ;;  %v929_v56 = vpop.f32.mrb[13].mxu0  ;;  %v1216_v33 = vpop.permute.xlu1 %1215 }
 0x189   : > { %v761_v57 = vadd.f32 %v715_v34, %v654_v53  ;;  %v931_v58 = vpop.f32.mrb[14].mxu0 }
 0x18a   : > { %v867_v59 = vadd.f32 %v820_v42, %v760_v55  ;;  %v932_v60 = vpop.f32.mrb[15].mxu0 }
 0x18b   : > { %v868_v61 = vadd.f32 %v822_v43, %v761_v57  ;;  %v540_v62 = vpop.f32.mrb[20].mxu1  ;;  %v1239_v57 = vlaneseq }
 0x18c   : > { %v548_v63 = vadd.f32 %v540_v62, %v437_v38  ;;  %v974_v1 = vadd.f32 %v927_v54, %v867_v59  ;;  %v4301_v2 = vpop.f32.mrb[21].mxu1  ;;  %v4698_v59 = vmov 0.0|0.0  }
 0x18d   : > { %v975_v3 = vadd.f32 %v929_v56, %v868_v61  ;;  %v543_v4 = vpop.f32.mrb[22].mxu1  ;;  %4539 = vmatprep.subr.bf16.mxu1 %v4698_v59  ;;  %4545 = vmatprep.subr.bf16.mxu0 %v4698_v59  ;;  %v1240_v62 = vshrl.u32 %v1239_v57, 7 }
 0x18e   : > { %v4302_v5 = vpop.f32.mrb[23].mxu1 }
 0x18f   : > { %v1034_v6 = vpop.f32.mrb[16].mxu0  ;;  %v1241_v2 = vadd.s32 8, %v1240_v62 }
 0x190   : > { %v1081_v7 = vadd.f32 %v1034_v6, %v974_v1  ;;  %v1036_v8 = vpop.f32.mrb[17].mxu0  ;;  %v2451_v6 = vld [vmem:[%s5319_s4 + $0x38] sm:$0xff] }
 0x191   : > { %v1082_v9 = vadd.f32 %v1036_v8, %v975_v3  ;;  %v1038_v10 = vpop.f32.mrb[18].mxu0  ;;  %v4699_v8 = vmov 1.0|1.0  }
 0x192   : > { %v1039_v0 = vpop.f32.mrb[19].mxu0 }
 0x193   : > { %v647_v11 = vpop.f32.mrb[24].mxu1 }
 0x194   : > { %v655_v12 = vadd.f32 %v647_v11, %v548_v63  ;;  %v4307_v13 = vpop.f32.mrb[25].mxu1  ;;  %v1243_v63 = vand.u32 127, %v1239_v57 }
 0x195   : > { %v650_v14 = vpop.f32.mrb[26].mxu1 }
 0x196   : > { %v4308_v15 = vpop.f32.mrb[27].mxu1  ;;  %v1244_v3 = vmul.u32 2, %v1243_v63  ;;  %v2448_v63 = vld [vmem:[%s5319_s4 + $0x20] sm:$0xff] }
 0x197   : > { %v1141_v17 = vpop.f32.mrb[20].mxu0 }
 0x198   : > { %v1188_v20 = vadd.f32 %v1141_v17, %v1081_v7  ;;  %v1143_v21 = vpop.f32.mrb[21].mxu0  ;;  %vm4972_vm11 = vcmp.eq.s32.totalorder %v1240_v62, %v1244_v3  ;;  %vm1246_vm12 = vcmp.eq.s32.totalorder %v1241_v2, %v1244_v3  ;;  %v4652_v62 = vld [vmem:[%s5317_s2] sm:$0xff]   ;;  %v2450_v2 = vld [vmem:[%s5319_s4 + $0x30] sm:$0xff]  ;;  %v2449_v3 = vld [vmem:[%s5319_s4 + $0x28] sm:$0xff] }
 0x199   : > { %v1189_v22 = vadd.f32 %v1143_v21, %v1082_v9  ;;  %v1145_v23 = vpop.f32.mrb[22].mxu0  ;;  %vm4978_vm13 = vmpackc.low %vm1246_vm12, %vm4972_vm11  ;;  %vm1933_vm12 = vcmask 64512  }
 0x19a   : > { %v1199_v24 = vadd.f32 %v1197_v16, %v1188_v20  ;;  %v1146_v25 = vpop.f32.mrb[23].mxu0  ;;  %4541 = vmatpush3.bf16.msk.msra.mxu1 %vm4978_vm13, %v4699_v8  ;;  %4547 = vmatpush3.bf16.msk.msra.mxu0 %vm4978_vm13, %v4699_v8 }
 0x19b   : > { %v1200_v26 = vadd.f32 %v1197_v16, %v1189_v22  ;;  %v754_v27 = vpop.f32.mrb[28].mxu1  ;;  %4542 = vmatprep.subr.bf16.mxu1 %v4698_v59  ;;  %4551 = vmatprep.subr.bf16.mxu0 %v4698_v59 }
 0x19c   : > { %v1202_v28 = vmax.f32 %v1199_v24, 0.0  ;;  %v762_v29 = vadd.f32 %v754_v27, %v655_v12  ;;  %v4313_v30 = vpop.f32.mrb[29].mxu1 }
 0x19d   : > { %v1203_v31 = vmax.f32 %v1200_v26, 0.0  ;;  %v757_v32 = vpop.f32.mrb[30].mxu1 }
 0x19e   : > { %v1210_v34 = vmul.f32 %v1208_v18, %v1202_v28  ;;  %v4314_v35 = vpop.f32.mrb[31].mxu1 }
 0x19f   : > { %v1211_v36 = vmul.f32 %v1208_v18, %v1203_v31 }
 0x1a0   : > { %v1218_v37 = vadd.f32 %v1216_v33, %v1210_v34 }
 0x1a1   : > { %v1219_v38 = vadd.f32 %v1216_v33, %v1211_v36 }
 0x1a2   : > { %1224 = vrot.lane.b32.xlu0 %v1218_v37, %s4688_s24 }
 0x1a3   : > { %v861_v39 = vpop.f32.mrb[32].mxu1  ;;  %1226 = vrot.lane.b32.xlu1 %v1219_v38, %s4688_s24 }
 0x1a4   : > { %v869_v40 = vadd.f32 %v861_v39, %v762_v29  ;;  %v4319_v41 = vpop.f32.mrb[33].mxu1 }
 0x1a5   : > { %v864_v42 = vpop.f32.mrb[34].mxu1 }
 0x1a6   : > { %v4320_v43 = vpop.f32.mrb[35].mxu1 }
 0x1ab   : > { %v968_v44 = vpop.f32.mrb[36].mxu1 }
 0x1ac   : > { %v976_v45 = vadd.f32 %v968_v44, %v869_v40  ;;  %v4325_v46 = vpop.f32.mrb[37].mxu1 }
 0x1ad   : > { %v971_v47 = vpop.f32.mrb[38].mxu1 }
 0x1ae   : > { %v4326_v48 = vpop.f32.mrb[39].mxu1 }
 0x1b3   : > { %v1075_v49 = vpop.f32.mrb[40].mxu1 }
 0x1b4   : > { %v1083_v50 = vadd.f32 %v1075_v49, %v976_v45  ;;  %v4331_v51 = vpop.f32.mrb[41].mxu1 }
 0x1b5   : > { %v1078_v52 = vpop.f32.mrb[42].mxu1 }
 0x1b6   : > { %v4332_v53 = vpop.f32.mrb[43].mxu1 }
 0x1bb   : > { %v1182_v54 = vpop.f32.mrb[44].mxu1 }
 0x1bc   : > { %v1190_v55 = vadd.f32 %v1182_v54, %v1083_v50  ;;  %v4337_v56 = vpop.f32.mrb[45].mxu1 }
 0x1bd   : > { %v1185_v58 = vpop.f32.mrb[46].mxu1 }
 0x1be   : > { %v1201_v60 = vadd.f32 %v1197_v16, %v1190_v55  ;;  %v4338_v61 = vpop.f32.mrb[47].mxu1 }
 0x1c0   : > { %v1204_v1 = vmax.f32 %v1201_v60, 0.0 }
 0x1c2   : > { %v1212_v4 = vmul.f32 %v1208_v18, %v1204_v1  ;;  %v2447_v1 = vld [vmem:[%s5319_s4 + $0x18] sm:$0xff] }
 0x1c4   : > { %v1220_v7 = vadd.f32 %v1216_v33, %v1212_v4  ;;  %v2452_v4 = vld [vmem:[%s5319_s4 + $0x40] sm:$0xff] }
 0x1c6   : > { %1228 = vrot.lane.b32.xlu0 %v1220_v7, %s4688_s24 }
 0x214   : > { %v1225_v9 = vpop.permute.xlu0 %1224 }
 0x215   : > { %v1227_v10 = vpop.permute.xlu1 %1226 }
 0x216   : > { %v1231_v0 = vsel %vm251_vm0, %v1225_v9, %v1227_v10  ;;  %v4653_v9 = vld [vmem:[%s5317_s2 + $0x8] sm:$0xff]  }
 0x217   : > { %v1236_v11 = vmax.f32 %v1218_v37, %v1231_v0 }
 0x219   : > { %1252 = vrot.lane.b32.xlu1 %v1236_v11, %s4690_s26 }
 0x238   : > { %v1229_v12 = vpop.permute.xlu0 %1228 }
 0x239   : > { %v1232_v13 = vsel %vm251_vm0, %v1227_v10, %v1229_v12  ;;  %v1238_v14 = vmax.f32 %v1220_v7, %v1229_v12  ;;  %vm1334_vm0 = vcmask 154712  }
 0x23a   : > { %v1237_v15 = vmax.f32 %v1219_v38, %v1232_v13  ;;  %v4654_v13 = vld [vmem:[%s5317_s2 + $0x18] sm:$0xff]  }
 0x23b   : > { %1828 = vrot.lane.b32.xlu1 %v1238_v14, %s4690_s26 }
 0x23c   : > { %1497 = vrot.lane.b32.xlu0 %v1237_v15, %s4690_s26  ;;  %s4701_s26 = smov 112  }
 0x28b   : > { %v1253_v16 = vpop.permute.xlu1 %1252 }
 0x28c   : > { %v1255_v17 = vmax.f32 %v1236_v11, %v1253_v16 }
 0x28e   : > { %4344 = vmatmul.mubr.msk.f32.vlgmr.msra.gmra.mrb[48].mxu1 %vm1256_vm14, %v1255_v17  ;;  %1416 = vrot.lane.b32.xlu1 %v1255_v17, %s4700_s13  ;;  %s4718_s13 = smov 107  }
 0x28f   : > { %1336 = vrot.lane.b32.xlu0 %v1255_v17, %s4693_s29  ;;  %4544 = vmatpush3.bf16.msk.msra.mxu1 %vm4978_vm13, %v4699_v8  ;;  %s4703_s29 = smov 40  }
 0x290   : > { %4350 = vmatprep.mubr.msk.f32.mxu1 %vm4697_vm4, %v4696_v19  ;;  %4548 = vmatprep.subr.bf16.mxu1 %v4698_v59 }
 0x2ad   : > { %v1829_v23 = vpop.permute.xlu1 %1828 }
 0x2ae   : > { %v1498_v18 = vpop.permute.xlu0 %1497  ;;  %v1832_v24 = vmax.f32 %v1238_v14, %v1829_v23  ;;  %v1831_v25 = vmax.f32 %v1237_v15, %v1829_v23  ;;  %v4657_v23 = vld [vmem:[%s5317_s2 + $0x20] sm:$0xff]  }
 0x2af   : > { %v1500_v20 = vsel %vm557_vm3, %v1253_v16, %v1498_v18  ;;  %v1585_v21 = vmax.f32 %v1237_v15, %v1498_v18  ;;  %vm1494_vm3 = vcmask 318712   ;;  %v4655_v16 = vld [vmem:[%s5317_s2 + $0x10] sm:$0xff]  }
 0x2b0   : > { %v1502_v22 = vmax.f32 %v1236_v11, %v1500_v20  ;;  %v4656_v20 = vld [vmem:[%s5317_s2 + $0x28] sm:$0xff]  }
 0x2b1   : > { %1587 = vrot.lane.b32.xlu1 %v1585_v21, %s4701_s26  ;;  %s4728_s26 = smov 120  }
 0x2b2   : > { %1504 = vrot.lane.b32.xlu0 %v1502_v22, %s4702_s14  ;;  %s4729_s14 = smov 114  }
 0x2b5   : > { %1747 = vrot.lane.b32.xlu1 %v1585_v21, %s4703_s29  ;;  %s4730_s29 = smov 115  }
 0x2b6   : > { %1667 = vrot.lane.b32.xlu0 %v1585_v21, %s4704_s15 }
 0x2b9   : > { %1837 = vrot.lane.b32.xlu1 %v1832_v24, %s4705_s16 }
 0x2ba   : > { %1835 = vrot.lane.b32.xlu0 %v1831_v25, %s4705_s16 }
 0x300   : > { %v1417_v26 = vpop.permute.xlu1 %1416 }
 0x301   : > { %v1337_v27 = vpop.permute.xlu0 %1336  ;;  %4358 = vmatmul.mubr.msk.f32.vlgmr.msra.gmra.mrb[24].mxu0 %vm1256_vm14, %v1417_v26  ;;  %v4659_v26 = vld [vmem:[%s5317_s2 + $0x38] sm:$0xff]  }
 0x302   : > { %4351 = vmatmul.mubr.msk.f32.vlgmr.msra.gmra.mrb[50].mxu1 %vm1256_vm14, %v1337_v27  ;;  %4553 = vmatpush3.bf16.msk.msra.mxu0 %vm4978_vm13, %v4699_v8  ;;  %v4658_v27 = vld [vmem:[%s5317_s2 + $0x30] sm:$0xff]  }
 0x303   : > { %4550 = vmatpush3.bf16.msk.msra.mxu1 %vm4978_vm13, %v4699_v8  ;;  %4371 = vmatprep.mubr.msk.f32.mxu0 %vm4697_vm4, %v4696_v19 }
 0x304   : > { %4364 = vmatprep.mubr.msk.f32.mxu1 %vm4697_vm4, %v4696_v19  ;;  %4557 = vmatprep.subr.bf16.mxu0 %v4698_v59 }
 0x305   : > { %4554 = vmatprep.subr.bf16.mxu1 %v4698_v59 }
 0x323   : > { %v1588_v28 = vpop.permute.xlu1 %1587 }
 0x324   : > { %4372 = vmatmul.mubr.msk.f32.vlgmr.msra.gmra.mrb[26].mxu0 %vm1256_vm14, %v1588_v28  ;;  %v1505_v29 = vpop.permute.xlu0 %1504 }
 0x325   : > { %4365 = vmatmul.mubr.msk.f32.vlgmr.msra.gmra.mrb[52].mxu1 %vm1256_vm14, %v1505_v29  ;;  %4559 = vmatpush3.bf16.msk.msra.mxu0 %vm4978_vm13, %v4699_v8 }
 0x326   : > { %4556 = vmatpush3.bf16.msk.msra.mxu1 %vm4978_vm13, %v4699_v8  ;;  %4385 = vmatprep.mubr.msk.f32.mxu0 %vm4697_vm4, %v4696_v19 }
 0x327   : > { %v1748_v30 = vpop.permute.xlu1 %1747  ;;  %4378 = vmatprep.mubr.msk.f32.mxu1 %vm4697_vm4, %v4696_v19  ;;  %4560 = vmatprep.subr.bf16.mxu1 %v4698_v59 }
 0x328   : > { %4386 = vmatmul.mubr.msk.f32.vlgmr.msra.gmra.mrb[28].mxu0 %vm1256_vm14, %v1748_v30  ;;  %v1668_v31 = vpop.permute.xlu0 %1667  ;;  %4395 = vmatprep.subr.bf16.mxu0 %v4696_v19  ;;  %v4660_v30 = vld [vmem:[%s5317_s2 + $0x40] sm:$0xff]  }
 0x329   : > { %4379 = vmatmul.mubr.msk.f32.vlgmr.msra.gmra.mrb[54].mxu1 %vm1256_vm14, %v1668_v31  ;;  %4397 = vmatprep.mubr.msk.bf16.mxu0 %vm4697_vm4, %v4696_v19 }
 0x32a   : > { %4562 = vmatpush3.bf16.msk.msra.mxu1 %vm4978_vm13, %v4699_v8  ;;  %4392 = vmatprep.mubr.msk.f32.mxu1 %vm4697_vm4, %v4696_v19  ;;  %vm2600_vm13 = vcmask 89144  }
 0x32b   : > { %v1838_v32 = vpop.permute.xlu1 %1837  ;;  %4401 = vmatprep.subr.bf16.mxu1 %v4696_v19 }
 0x32c   : > { %v1836_v33 = vpop.permute.xlu0 %1835 }
 0x32d   : > { %v1839_v34 = vsel %vm254_vm2, %v1836_v33, %v1838_v32 }
 0x32e   : > { %4393 = vmatmul.mubr.msk.f32.vlgmr.msra.gmra.mrb[56].mxu1 %vm1256_vm14, %v1839_v34 }
 0x32f   : > { %4403 = vmatprep.mubr.msk.bf16.mxu1 %vm4697_vm4, %v4696_v19 }
 0x361   : > { %v1326_v35 = vpop.f32.mrb[48].mxu1 }
 0x362   : > { %v4345_v36 = vpop.f32.mrb[49].mxu1  ;;  %1331 = vrot.lane.b32.xlu0 %v1326_v35, %s4706_s17 }
 0x3d4   : > { %v1486_v37 = vpop.f32.mrb[24].mxu0  ;;  %v1332_v38 = vpop.permute.xlu0 %1331 }
 0x3d5   : > { %v1406_v39 = vpop.f32.mrb[50].mxu1  ;;  %1335 = vst.msk [vmem:[#allocation2] sm:$0xff] %vm1334_vm0, %v1332_v38  ;;  %v4359_v40 = vpop.f32.mrb[25].mxu0  ;;  %1491 = vrot.lane.b32.xlu0 %v1486_v37, %s4707_s20  ;;  %vm2788_vm0 = vcmask 187544  }
 0x3d6   : > { %1411 = vrot.lane.b32.xlu1 %v1406_v39, %s4708_s21  ;;  %v4352_v41 = vpop.f32.mrb[51].mxu1 }
 0x3f7   : > { %v1657_v42 = vpop.f32.mrb[26].mxu0 }
 0x3f8   : > { %v1574_v43 = vpop.f32.mrb[52].mxu1  ;;  %v4373_v44 = vpop.f32.mrb[27].mxu0  ;;  %1662 = vrot.lane.b32.xlu0 %v1657_v42, %s4709_s22 }
 0x3f9   : > { %1579 = vrot.lane.b32.xlu1 %v1574_v43, %s4710_s23  ;;  %v4366_v45 = vpop.f32.mrb[53].mxu1 }
 0x3fb   : > { %v1817_v46 = vpop.f32.mrb[28].mxu0 }
 0x3fc   : > { %v1737_v47 = vpop.f32.mrb[54].mxu1  ;;  %v4387_v48 = vpop.f32.mrb[29].mxu0  ;;  %1822 = vrot.lane.b32.xlu0 %v1817_v46, %s4711_s27  ;;  %s4720_s27 = smov 88  }
 0x3fd   : > { %1742 = vrot.lane.b32.xlu1 %v1737_v47, %s4712_s30  ;;  %v4380_v49 = vpop.f32.mrb[55].mxu1  ;;  %s4723_s30 = smov 13  }
 0x401   : > { %v1908_v50 = vpop.f32.mrb[56].mxu1 }
 0x402   : > { %1913 = vrot.lane.b32.xlu1 %v1908_v50, %s4713_s6  ;;  %v4394_v51 = vpop.f32.mrb[57].mxu1  ;;  %s4724_s6 = smov 19  }
 0x447   : > { %v1492_v52 = vpop.permute.xlu0 %1491 }
 0x448   : > { %v1412_v53 = vpop.permute.xlu1 %1411 }
 0x449   : > { %1415 = vst.msk [vmem:[#allocation2] sm:$0xff] %vm1414_vm1, %v1412_v53  ;;  %vm2882_vm1 = vcmask 236744  }
 0x44a   : > { %1495 = vst.msk [vmem:[#allocation2] sm:$0xff] %vm1494_vm3, %v1492_v52 }
 0x46a   : > { %v1663_v54 = vpop.permute.xlu0 %1662 }
 0x46b   : > { %v1580_v55 = vpop.permute.xlu1 %1579 }
 0x46c   : > { %1583 = vst.msk [vmem:[#allocation2] sm:$0xff] %vm1582_vm5, %v1580_v55 }
 0x46d   : > { %1666 = vst.msk [vmem:[#allocation2] sm:$0xff] %vm1665_vm6, %v1663_v54 }
 0x46e   : > { %v1823_v57 = vpop.permute.xlu0 %1822 }
 0x46f   : > { %v1743_v56 = vpop.permute.xlu1 %1742 }
 0x470   : > { %1746 = vst.msk [vmem:[#allocation2] sm:$0xff] %vm1745_vm7, %v1743_v56 }
 0x471   : > { %1826 = vst.msk [vmem:[#allocation2] sm:$0xff] %vm1825_vm8, %v1823_v57 }
 0x474   : > { %v1914_v58 = vpop.permute.xlu1 %1913 }
 0x475   : > { %1917 = vst.msk [vmem:[#allocation2] sm:$0xff] %vm1916_vm9, %v1914_v58 }
 0x47c   : > { %v1918_v59 = vld [vmem:[#allocation2] sm:$0xff] }
 0x47d   : > { %v1919_v60 = vpack.c.bf16 %v1918_v59, %v1918_v59 }
 0x47f   : > { %2042 = vrot.lane.b32.xlu1 %v1919_v60, %s4689_s25  ;;  %1931 = vrot.lane.b32.xlu0 %v1919_v60, %s4688_s24  ;;  %v1991_v61 = vsel %vm1937_vm10, %v1919_v60, 0 }
 0x480   : > { %4402 = vmatpush3.bf16.msra.mxu1 %v1991_v61 }
 0x481   : > { %4413 = vmatprep.subr.bf16.mxu1 %v4696_v19 }
 0x483   : > { %2160 = vrot.lane.b32.xlu1 %v1919_v60, %s4714_s9  ;;  %2101 = vrot.lane.b32.xlu0 %v1919_v60, %s4715_s10 }
 0x484   : > { %4404 = vmatmul.mubr.msk.bf16.vlgmr.msra.gmra.mrb[60].mxu1 %vm1933_vm12, %v4652_v62 }
 0x485   : > { %4415 = vmatprep.mubr.msk.bf16.mxu1 %vm4697_vm4, %v4696_v19 }
 0x487   : > { %2278 = vrot.lane.b32.xlu1 %v1919_v60, %s4692_s28  ;;  %2219 = vrot.lane.b32.xlu0 %v1919_v60, %s4716_s11 }
 0x48b   : > { %2396 = vrot.lane.b32.xlu1 %v1919_v60, %s4717_s12  ;;  %2337 = vrot.lane.b32.xlu0 %v1919_v60, %s4718_s13  ;;  %s4726_s12 = smov 121   ;;  %s4727_s13 = smov 122  }
 0x48f   : > { %2460 = vperm.xlu1 %4650, %v2448_v63   ;;  %2455 = vperm.xlu0 %4649, %v2447_v1  }
 0x493   : > { %2474 = vperm.xlu1 %4650, %v2450_v2   ;;  %2469 = vperm.xlu0 %4649, %v2449_v3  }
 0x497   : > { %2486 = vperm.xlu1 %4650, %v2452_v4   ;;  %2481 = vperm.xlu0 %4649, %v2451_v6  }
 0x4f1   : > { %v1932_v7 = vpop.permute.xlu0 %1931  ;;  %v2043_v10 = vpop.permute.xlu1 %2042 }
 0x4f2   : > { %v1939_v8 = vsel %vm1937_vm10, %v1932_v7, 0  ;;  %v2048_v11 = vsel %vm1937_vm10, %v2043_v10, 0 }
 0x4f3   : > { %4396 = vmatpush3.bf16.msra.mxu0 %v1939_v8 }
 0x4f4   : > { %4407 = vmatprep.subr.bf16.mxu0 %v4696_v19 }
 0x4f5   : > { %v2102_v0 = vpop.permute.xlu0 %2101  ;;  %v2161_v17 = vpop.permute.xlu1 %2160 }
 0x4f6   : > { %v2107_v12 = vsel %vm1937_vm10, %v2102_v0, 0  ;;  %4398 = vmatmul.mubr.msk.bf16.vlgmr.msra.gmra.mrb[32].mxu0 %vm1933_vm12, %v4653_v9  ;;  %v2166_v18 = vsel %vm1937_vm10, %v2161_v17, 0 }
 0x4f7   : > { %4408 = vmatpush3.bf16.msra.mxu0 %v2048_v11  ;;  %4414 = vmatpush3.bf16.msra.mxu1 %v2107_v12 }
 0x4f8   : > { %4425 = vmatprep.subr.bf16.mxu1 %v4696_v19  ;;  %4409 = vmatprep.mubr.msk.bf16.mxu0 %vm4697_vm4, %v4696_v19 }
 0x4f9   : > { %v2220_v14 = vpop.permute.xlu0 %2219  ;;  %4419 = vmatprep.subr.bf16.mxu0 %v4696_v19  ;;  %v2279_v24 = vpop.permute.xlu1 %2278 }
 0x4fa   : > { %v2225_v15 = vsel %vm1937_vm10, %v2220_v14, 0  ;;  %4416 = vmatmul.mubr.msk.bf16.vlgmr.msra.gmra.mrb[64].mxu1 %vm1933_vm12, %v4654_v13  ;;  %v2284_v25 = vsel %vm1937_vm10, %v2279_v24, 0 }
 0x4fb   : > { %4426 = vmatpush3.bf16.msra.mxu1 %v2225_v15  ;;  %4427 = vmatprep.mubr.msk.bf16.mxu1 %vm4697_vm4, %v4696_v19 }
 0x4fc   : > { %4437 = vmatprep.subr.bf16.mxu1 %v4696_v19 }
 0x4fd   : > { %v2338_v21 = vpop.permute.xlu0 %2337  ;;  %v2397_v28 = vpop.permute.xlu1 %2396 }
 0x4fe   : > { %4410 = vmatmul.mubr.msk.bf16.vlgmr.msra.gmra.mrb[36].mxu0 %vm1933_vm12, %v4655_v16  ;;  %v2343_v22 = vsel %vm1937_vm10, %v2338_v21, 0  ;;  %v2402_v29 = vsel %vm1937_vm10, %v2397_v28, 0 }
 0x4ff   : > { %4420 = vmatpush3.bf16.msra.mxu0 %v2166_v18  ;;  %4421 = vmatprep.mubr.msk.bf16.mxu0 %vm4697_vm4, %v4696_v19 }
 0x500   : > { %4431 = vmatprep.subr.bf16.mxu0 %v4696_v19 }
 0x502   : > { %4428 = vmatmul.mubr.msk.bf16.vlgmr.msra.gmra.mrb[68].mxu1 %vm1933_vm12, %v4656_v20 }
 0x503   : > { %4438 = vmatpush3.bf16.msra.mxu1 %v2343_v22  ;;  %4439 = vmatprep.mubr.msk.bf16.mxu1 %vm4697_vm4, %v4696_v19 }
 0x506   : > { %4422 = vmatmul.mubr.msk.bf16.vlgmr.msra.gmra.mrb[40].mxu0 %vm1933_vm12, %v4657_v23 }
 0x507   : > { %4432 = vmatpush3.bf16.msra.mxu0 %v2284_v25  ;;  %4433 = vmatprep.mubr.msk.bf16.mxu0 %vm4697_vm4, %v4696_v19 }
 0x508   : > { %4443 = vmatprep.subr.bf16.mxu0 %v4696_v19 }
 0x50a   : > { %4440 = vmatmul.mubr.msk.bf16.vlgmr.msra.gmra.mrb[72].mxu1 %vm1933_vm12, %v4659_v26 }
 0x50e   : > { %4434 = vmatmul.mubr.msk.bf16.vlgmr.msra.gmra.mrb[44].mxu0 %vm1933_vm12, %v4658_v27  ;;  %v2456_v13 = vpop.permute.xlu0 %2455  ;;  %v2461_v15 = vpop.permute.xlu1 %2460 }
 0x50f   : > { %4444 = vmatpush3.bf16.msra.mxu0 %v2402_v29  ;;  %4445 = vmatprep.mubr.msk.bf16.mxu0 %vm4697_vm4, %v4696_v19  ;;  %vm228_vm4 = vcmask 310272  }
 0x510   : > { %230 = vst.msk [vmem:[#allocation3 + $0x8] sm:$0xff] %vm228_vm4, %v4696_v19  ;;  %229 = vst.msk [vmem:[#allocation3] sm:$0xff] %vm228_vm4, %v4696_v19 }
 0x512   : > { %v2470_v20 = vpop.permute.xlu0 %2469  ;;  %v2475_v25 = vpop.permute.xlu1 %2474 }
 0x516   : > { %4446 = vmatmul.mubr.msk.bf16.vlgmr.msra.gmra.mrb[48].mxu0 %vm1933_vm12, %v4660_v30  ;;  %v2482_v30 = vpop.permute.xlu0 %2481 }
 0x557   : > { %v2027_v31 = vpop.f32.mrb[60].mxu1 }
 0x558   : > { %v4405_v32 = vpop.f32.mrb[61].mxu1 }
 0x559   : > { %v2030_v33 = vpop.f32.mrb[62].mxu1 }
 0x55a   : > { %v4406_v34 = vpop.f32.mrb[63].mxu1 }
 0x5c9   : > { %v1975_v35 = vpop.f32.mrb[32].mxu0 }
 0x5ca   : > { %v2028_v36 = vadd.f32 %v2027_v31, %v1975_v35  ;;  %v4399_v37 = vpop.f32.mrb[33].mxu0  ;;  %v4719_v35 = vmov 1.0  }
 0x5cb   : > { %v1978_v38 = vpop.f32.mrb[34].mxu0  ;;  %4449 = vmatprep.subr.msk.mxu1 %vm4972_vm11, %v4719_v35  ;;  %4459 = vmatprep.subr.msk.mxu0 %vm4972_vm11, %v4719_v35 }
 0x5cc   : > { %v2031_v39 = vadd.f32 %v2030_v33, %v1978_v38  ;;  %v4400_v40 = vpop.f32.mrb[35].mxu0  ;;  %v2487_v33 = vpop.permute.xlu1 %2486  ;;  %4450 = vmatpush3.msk.msra.mxu1 %vm4972_vm11, %v4719_v35  ;;  %4460 = vmatpush3.msk.msra.mxu0 %vm4972_vm11, %v4719_v35 }
 0x5cd   : > { %v2143_v41 = vpop.f32.mrb[64].mxu1  ;;  %4454 = vmatprep.subr.msk.mxu1 %vm4972_vm11, %v4719_v35 }
 0x5ce   : > { %v4417_v42 = vpop.f32.mrb[65].mxu1 }
 0x5cf   : > { %v2146_v43 = vpop.f32.mrb[66].mxu1 }
 0x5d0   : > { %v4418_v44 = vpop.f32.mrb[67].mxu1 }
 0x5d1   : > { %v2084_v45 = vpop.f32.mrb[36].mxu0 }
 0x5d2   : > { %v2091_v46 = vadd.f32 %v2084_v45, %v2028_v36  ;;  %v4411_v47 = vpop.f32.mrb[37].mxu0 }
 0x5d3   : > { %v2087_v48 = vpop.f32.mrb[38].mxu0 }
 0x5d4   : > { %v2092_v49 = vadd.f32 %v2087_v48, %v2031_v39  ;;  %v2150_v50 = vadd.f32 %v2143_v41, %v2091_v46  ;;  %v4412_v51 = vpop.f32.mrb[39].mxu0 }
 0x5d5   : > { %v2261_v52 = vpop.f32.mrb[68].mxu1 }
 0x5d6   : > { %v2151_v53 = vadd.f32 %v2146_v43, %v2092_v49  ;;  %v4429_v54 = vpop.f32.mrb[69].mxu1 }
 0x5d7   : > { %v2264_v55 = vpop.f32.mrb[70].mxu1 }
 0x5d8   : > { %v4430_v56 = vpop.f32.mrb[71].mxu1 }
 0x5d9   : > { %v2202_v57 = vpop.f32.mrb[40].mxu0 }
 0x5da   : > { %v2209_v58 = vadd.f32 %v2202_v57, %v2150_v50  ;;  %v4423_v59 = vpop.f32.mrb[41].mxu0 }
 0x5db   : > { %v2205_v60 = vpop.f32.mrb[42].mxu0 }
 0x5dc   : > { %v2210_v61 = vadd.f32 %v2205_v60, %v2151_v53  ;;  %v2268_v62 = vadd.f32 %v2261_v52, %v2209_v58  ;;  %v4424_v63 = vpop.f32.mrb[43].mxu0 }
 0x5dd   : > { %v2379_v1 = vpop.f32.mrb[72].mxu1 }
 0x5de   : > { %v2269_v2 = vadd.f32 %v2264_v55, %v2210_v61  ;;  %v4441_v3 = vpop.f32.mrb[73].mxu1 }
 0x5df   : > { %v2382_v4 = vpop.f32.mrb[74].mxu1  ;;  %v4661_v3 = vld [vmem:[%s5318_s3 + $0x10] sm:$0xff]  }
 0x5e0   : > { %v4442_v6 = vpop.f32.mrb[75].mxu1 }
 0x5e1   : > { %v2320_v7 = vpop.f32.mrb[44].mxu0 }
 0x5e2   : > { %v2327_v8 = vadd.f32 %v2320_v7, %v2268_v62  ;;  %v4435_v9 = vpop.f32.mrb[45].mxu0 }
 0x5e3   : > { %v2323_v10 = vpop.f32.mrb[46].mxu0  ;;  %v3570_v9 = vld [vmem:[%s5319_s4 + $0x48] sm:$0xff] }
 0x5e4   : > { %v2328_v0 = vadd.f32 %v2323_v10, %v2269_v2  ;;  %v2386_v11 = vadd.f32 %v2379_v1, %v2327_v8  ;;  %v4436_v12 = vpop.f32.mrb[47].mxu0  ;;  %v3571_v8 = vld [vmem:[%s5319_s4 + $0x50] sm:$0xff]  ;;  %v3574_v10 = vld [vmem:[%s5319_s4 + $0x68] sm:$0xff] }
 0x5e5   : > { %v3573_v12 = vld [vmem:[%s5319_s4 + $0x60] sm:$0xff] }
 0x5e6   : > { %v2387_v14 = vadd.f32 %v2382_v4, %v2328_v0  ;;  %v3572_v0 = vld [vmem:[%s5319_s4 + $0x58] sm:$0xff] }
 0x5e9   : > { %v2438_v16 = vpop.f32.mrb[48].mxu0 }
 0x5ea   : > { %v2445_v17 = vadd.f32 %v2438_v16, %v2386_v11  ;;  %v4447_v18 = vpop.f32.mrb[49].mxu0  ;;  %v3575_v11 = vld [vmem:[%s5319_s4 + $0x70] sm:$0xff]  ;;  %v3576_v16 = vld [vmem:[%s5319_s4 + $0x78] sm:$0xff] }
 0x5eb   : > { %v2441_v21 = vpop.f32.mrb[50].mxu0  ;;  %v3580_v18 = vld [vmem:[%s5319_s4 + $0x98] sm:$0xff] }
 0x5ec   : > { %v2463_v22 = vadd.f32 %v2456_v13, %v2445_v17  ;;  %v2446_v23 = vadd.f32 %v2441_v21, %v2387_v14  ;;  %v4448_v24 = vpop.f32.mrb[51].mxu0  ;;  %v3579_v13 = vld [vmem:[%s5319_s4 + $0x90] sm:$0xff]  ;;  %v3578_v14 = vld [vmem:[%s5319_s4 + $0x88] sm:$0xff]  ;;  %v3581_v17 = vld [vmem:[%s5319_s4 + $0xa0] sm:$0xff] }
 0x5ed   : > { %v4662_v21 = vld [vmem:[%s5318_s3 + $0x18] sm:$0xff]   ;;  %v4664_v24 = vld [vmem:[%s5318_s3 + $0x8] sm:$0xff]  }
 0x5ee   : > { %v2465_v26 = vmax.f32 %v2463_v22, 0.0  ;;  %v2464_v27 = vadd.f32 %v2461_v15, %v2446_v23  ;;  %v3577_v15 = vld [vmem:[%s5319_s4 + $0x80] sm:$0xff] }
 0x5ef   : > { %v4663_v22 = vld [vmem:[%s5318_s3] sm:$0xff]  }
 0x5f0   : > { %v2477_v28 = vmul.f32 %v2470_v20, %v2465_v26  ;;  %v2466_v29 = vmax.f32 %v2464_v27, 0.0  ;;  %v4666_v27 = vld [vmem:[%s5318_s3 + $0x28] sm:$0xff]  }
 0x5f2   : > { %v2478_v31 = vmul.f32 %v2475_v25, %v2466_v29  ;;  %v2489_v32 = vadd.f32 %v2482_v30, %v2477_v28  ;;  %v4665_v25 = vld [vmem:[%s5318_s3 + $0x20] sm:$0xff]   ;;  %v4667_v28 = vld [vmem:[%s5318_s3 + $0x30] sm:$0xff]   ;;  %v4668_v30 = vld [vmem:[%s5318_s3 + $0x38] sm:$0xff]  }
 0x5f4   : > { %2493 = vrot.lane.b32.xlu0 %v2489_v32, %s4688_s24  ;;  %v2490_v34 = vadd.f32 %v2487_v33, %v2478_v31  ;;  %v4669_v31 = vld [vmem:[%s5318_s3 + $0x40] sm:$0xff]   ;;  %v4670_v33 = vld [vmem:[%s5318_s3 + $0x48] sm:$0xff]  }
 0x5f6   : > { %2495 = vrot.lane.b32.xlu1 %v2490_v34, %s4688_s24 }
 0x666   : > { %v2494_v36 = vpop.permute.xlu0 %2493 }
 0x667   : > { %v2499_v37 = vmax.f32 %v2489_v32, %v2494_v36  ;;  %v4672_v36 = vld [vmem:[%s5318_s3 + $0x58] sm:$0xff]  }
 0x668   : > { %v2496_v38 = vpop.permute.xlu1 %2495 }
 0x669   : > { %v2500_v39 = vmax.f32 %v2490_v34, %v2496_v38  ;;  %2503 = vrot.lane.b32.xlu0 %v2499_v37, %s4715_s10  ;;  %v4671_v34 = vld [vmem:[%s5318_s3 + $0x50] sm:$0xff]  }
 0x66b   : > { %2505 = vrot.lane.b32.xlu1 %v2500_v39, %s4715_s10  ;;  %s4721_s10 = smov 68  }
 0x6db   : > { %v2504_v40 = vpop.permute.xlu0 %2503 }
 0x6dc   : > { %v2509_v41 = vmax.f32 %v2499_v37, %v2504_v40  ;;  %v4673_v37 = vld [vmem:[%s5318_s3 + $0x60] sm:$0xff]   ;;  %v4675_v40 = vld [vmem:[%s5318_s3 + $0x70] sm:$0xff]  }
 0x6dd   : > { %v2506_v42 = vpop.permute.xlu1 %2505 }
 0x6de   : > { %v2510_v43 = vmax.f32 %v2500_v39, %v2506_v42  ;;  %2603 = vrot.lane.b32.xlu0 %v2509_v41, %s4692_s28  ;;  %4451 = vmatprep.mubr.msk.f32.mxu1 %vm1933_vm12, %v2509_v41  ;;  %v4674_v39 = vld [vmem:[%s5318_s3 + $0x68] sm:$0xff]   ;;  %v4676_v42 = vld [vmem:[%s5318_s3 + $0x78] sm:$0xff]  }
 0x6e0   : > { %2605 = vrot.lane.b32.xlu1 %v2510_v43, %s4692_s28  ;;  %4452 = vmatmul.mubr.msk.f32.vlgmr.msra.gmra.mrb[58].mxu1 %vm1933_vm12, %v2510_v43  ;;  %s4722_s28 = smov 7  }
 0x6e1   : > { %4455 = vmatpush3.msk.msra.mxu1 %vm4972_vm11, %v4719_v35 }
 0x6e2   : > { %2697 = vrot.lane.b32.xlu0 %v2509_v41, %s4720_s27  ;;  %4464 = vmatprep.subr.msk.mxu1 %vm4972_vm11, %v4719_v35 }
 0x6e4   : > { %2699 = vrot.lane.b32.xlu1 %v2510_v43, %s4720_s27 }
 0x6e6   : > { %2791 = vrot.lane.b32.xlu0 %v2509_v41, %s4721_s10 }
 0x6e8   : > { %2793 = vrot.lane.b32.xlu1 %v2510_v43, %s4721_s10  ;;  %v4677_v43 = vld [vmem:[%s5318_s3 + $0x80] sm:$0xff]  }
 0x750   : > { %v2604_v44 = vpop.permute.xlu0 %2603 }
 0x751   : > { %4456 = vmatprep.mubr.msk.f32.mxu1 %vm1933_vm12, %v2604_v44  ;;  %v4678_v44 = vld [vmem:[%s5318_s3 + $0x88] sm:$0xff]  }
 0x752   : > { %v2606_v45 = vpop.permute.xlu1 %2605 }
 0x753   : > { %4457 = vmatmul.mubr.msk.f32.vlgmr.msra.gmra.mrb[76].mxu1 %vm1933_vm12, %v2606_v45 }
 0x754   : > { %v2698_v46 = vpop.permute.xlu0 %2697  ;;  %4465 = vmatpush3.msk.msra.mxu1 %vm4972_vm11, %v4719_v35 }
 0x755   : > { %4461 = vmatprep.mubr.msk.f32.mxu0 %vm1933_vm12, %v2698_v46 }
 0x756   : > { %v2700_v47 = vpop.permute.xlu1 %2699 }
 0x757   : > { %4462 = vmatmul.mubr.msk.f32.vlgmr.msra.gmra.mrb[30].mxu0 %vm1933_vm12, %v2700_v47 }
 0x758   : > { %v2792_v48 = vpop.permute.xlu0 %2791  ;;  %4471 = vmatprep.mubr.msk.bf16.mxu0 %vm1256_vm14, %v4661_v3 }
 0x759   : > { %4466 = vmatprep.mubr.msk.f32.mxu1 %vm1933_vm12, %v2792_v48 }
 0x75a   : > { %v2794_v49 = vpop.permute.xlu1 %2793 }
 0x75b   : > { %4467 = vmatmul.mubr.msk.f32.vlgmr.msra.gmra.mrb[78].mxu1 %vm1933_vm12, %v2794_v49 }
 0x7b3   : > { %v4453_v50 = vpop.f32.mrb[58].mxu1 }
 0x7b4   : > { %2596 = vrot.lane.b32.xlu1 %v4453_v50, %s4722_s28  ;;  %v2583_v51 = vpop.f32.mrb[59].mxu1 }
 0x7b5   : > { %2594 = vrot.lane.b32.xlu0 %v2583_v51, %s4722_s28 }
 0x826   : > { %v2597_v52 = vpop.permute.xlu1 %2596  ;;  %v4458_v53 = vpop.f32.mrb[76].mxu1 }
 0x827   : > { %2602 = vst.msk [vmem:[#allocation3 + $0x8] sm:$0xff] %vm2600_vm13, %v2597_v52  ;;  %v2595_v54 = vpop.permute.xlu0 %2594  ;;  %2690 = vrot.lane.b32.xlu1 %v4458_v53, %s4723_s30  ;;  %v2677_v55 = vpop.f32.mrb[77].mxu1 }
 0x828   : > { %2601 = vst.msk [vmem:[#allocation3] sm:$0xff] %vm2600_vm13, %v2595_v54  ;;  %2688 = vrot.lane.b32.xlu0 %v2677_v55, %s4723_s30 }
 0x82a   : > { %v4463_v56 = vpop.f32.mrb[30].mxu0 }
 0x82b   : > { %v2771_v57 = vpop.f32.mrb[31].mxu0  ;;  %2784 = vrot.lane.b32.xlu1 %v4463_v56, %s4724_s6 }
 0x82c   : > { %2782 = vrot.lane.b32.xlu0 %v2771_v57, %s4724_s6 }
 0x82e   : > { %v4468_v58 = vpop.f32.mrb[78].mxu1 }
 0x82f   : > { %2878 = vrot.lane.b32.xlu1 %v4468_v58, %s4725_s7  ;;  %v2865_v59 = vpop.f32.mrb[79].mxu1 }
 0x830   : > { %2876 = vrot.lane.b32.xlu0 %v2865_v59, %s4725_s7 }
 0x899   : > { %v2691_v60 = vpop.permute.xlu1 %2690 }
 0x89a   : > { %2696 = vst.msk [vmem:[#allocation3 + $0x8] sm:$0xff] %vm2694_vm15, %v2691_v60  ;;  %v2689_v61 = vpop.permute.xlu0 %2688 }
 0x89b   : > { %2695 = vst.msk [vmem:[#allocation3] sm:$0xff] %vm2694_vm15, %v2689_v61 }
 0x89d   : > { %v2785_v62 = vpop.permute.xlu1 %2784 }
 0x89e   : > { %2790 = vst.msk [vmem:[#allocation3 + $0x8] sm:$0xff] %vm2788_vm0, %v2785_v62  ;;  %v2783_v63 = vpop.permute.xlu0 %2782 }
 0x89f   : > { %2789 = vst.msk [vmem:[#allocation3] sm:$0xff] %vm2788_vm0, %v2783_v63 }
 0x8a1   : > { %v2879_v1 = vpop.permute.xlu1 %2878 }
 0x8a2   : > { %2884 = vst.msk [vmem:[#allocation3 + $0x8] sm:$0xff] %vm2882_vm1, %v2879_v1  ;;  %v2877_v2 = vpop.permute.xlu0 %2876 }
 0x8a3   : > { %2883 = vst.msk [vmem:[#allocation3] sm:$0xff] %vm2882_vm1, %v2877_v2 }
 0x8a9   : > { %v2886_v4 = vld [vmem:[#allocation3 + $0x8] sm:$0xff] }
 0x8aa   : > { %v2885_v6 = vld [vmem:[#allocation3] sm:$0xff] }
 0x8ab   : > { %v2887_v7 = vpack.c.bf16 %v2886_v4, %v2885_v6 }
 0x8ad   : > { %3046 = vrot.lane.b32.xlu1 %v2887_v7, %s4689_s25  ;;  %2908 = vrot.lane.b32.xlu0 %v2887_v7, %s4688_s24 }
 0x8b1   : > { %3200 = vrot.lane.b32.xlu1 %v2887_v7, %s4726_s12  ;;  %3123 = vrot.lane.b32.xlu0 %v2887_v7, %s4727_s13 }
 0x8b5   : > { %3354 = vrot.lane.b32.xlu1 %v2887_v7, %s4716_s11  ;;  %3277 = vrot.lane.b32.xlu0 %v2887_v7, %s4728_s26 }
 0x8b9   : > { %3508 = vrot.lane.b32.xlu1 %v2887_v7, %s4729_s14  ;;  %3431 = vrot.lane.b32.xlu0 %v2887_v7, %s4730_s29 }
 0x8bd   : > { %3589 = vperm.xlu1 %4650, %v3571_v8   ;;  %3584 = vperm.xlu0 %4649, %v3570_v9  }
 0x8c1   : > { %3612 = vperm.xlu1 %4650, %v3574_v10   ;;  %3594 = vperm.xlu0 %4649, %v3572_v0  }
 0x8c5   : > { %3617 = vperm.xlu1 %4650, %v3575_v11   ;;  %3599 = vperm.xlu0 %4649, %v3573_v12  }
 0x8c9   : > { %3641 = vperm.xlu1 %4650, %v3579_v13   ;;  %3636 = vperm.xlu0 %4649, %v3578_v14   ;;  %v4023_v14 = vsel %vm4972_vm11, 1.0, %v4696_v19  ;;  %vm3798_vm11 = vcmask 15360  }
 0x8ca   : > { %4523 = vmatprep.subr.msk.mxu1 %vm1937_vm10, %v4023_v14 }
 0x8cb   : > { %4524 = vmatpush3.msk.msra.mxu1 %vm1937_vm10, %v4023_v14 }
 0x8cc   : > { %4531 = vmatprep.subr.msk.mxu1 %vm1937_vm10, %v4023_v14 }
 0x8cd   : > { %3627 = vperm.xlu1 %4650, %v3577_v15   ;;  %3622 = vperm.xlu0 %4649, %v3576_v16  }
 0x8d1   : > { %3651 = vperm.xlu1 %4650, %v3581_v17   ;;  %3646 = vperm.xlu0 %4649, %v3580_v18  }
 0x91f   : > { %v2909_v20 = vpop.permute.xlu0 %2908  ;;  %v3047_v23 = vpop.permute.xlu1 %3046 }
 0x920   : > { %4469 = vmatprep.subr.bf16.mxu0 %v2909_v20 }
 0x921   : > { %4470 = vmatpush3.bf16.msra.mxu0 %v2909_v20 }
 0x922   : > { %4475 = vmatprep.subr.bf16.mxu0 %v2887_v7 }
 0x923   : > { %v3124_v26 = vpop.permute.xlu0 %3123  ;;  %v3201_v29 = vpop.permute.xlu1 %3200 }
 0x924   : > { %4472 = vmatmul.mubr.msk.bf16.vlgmr.msra.gmra.mrb[52].mxu0 %vm1256_vm14, %v4662_v21 }
 0x925   : > { %4476 = vmatpush3.bf16.msra.mxu0 %v2887_v7  ;;  %4477 = vmatprep.mubr.msk.bf16.mxu0 %vm1256_vm14, %v4663_v22 }
 0x926   : > { %4481 = vmatprep.subr.bf16.mxu0 %v3047_v23 }
 0x927   : > { %v3278_v32 = vpop.permute.xlu0 %3277  ;;  %v3355_v35 = vpop.permute.xlu1 %3354 }
 0x92b   : > { %v3432_v38 = vpop.permute.xlu0 %3431  ;;  %v3509_v41 = vpop.permute.xlu1 %3508 }
 0x930   : > { %4478 = vmatmul.mubr.msk.bf16.vlgmr.msra.gmra.mrb[52].mxu0 %vm1256_vm14, %v4664_v24 }
 0x931   : > { %4482 = vmatpush3.bf16.msra.mxu0 %v3047_v23  ;;  %4483 = vmatprep.mubr.msk.bf16.mxu0 %vm1256_vm14, %v4665_v25 }
 0x932   : > { %4487 = vmatprep.subr.bf16.mxu0 %v3124_v26 }
 0x93c   : > { %4484 = vmatmul.mubr.msk.bf16.vlgmr.msra.gmra.mrb[52].mxu0 %vm1256_vm14, %v4666_v27  ;;  %v3585_v45 = vpop.permute.xlu0 %3584  ;;  %v3590_v46 = vpop.permute.xlu1 %3589 }
 0x93d   : > { %4488 = vmatpush3.bf16.msra.mxu0 %v3124_v26  ;;  %4489 = vmatprep.mubr.msk.bf16.mxu0 %vm1256_vm14, %v4667_v28 }
 0x93e   : > { %4493 = vmatprep.subr.bf16.mxu0 %v3201_v29 }
 0x940   : > { %v3595_v47 = vpop.permute.xlu0 %3594  ;;  %v3613_v48 = vpop.permute.xlu1 %3612 }
 0x944   : > { %v3600_v49 = vpop.permute.xlu0 %3599  ;;  %v3618_v50 = vpop.permute.xlu1 %3617 }
 0x948   : > { %4490 = vmatmul.mubr.msk.bf16.vlgmr.msra.gmra.mrb[52].mxu0 %vm1256_vm14, %v4668_v30  ;;  %v3637_v51 = vpop.permute.xlu0 %3636  ;;  %v3642_v53 = vpop.permute.xlu1 %3641 }
 0x949   : > { %4494 = vmatpush3.bf16.msra.mxu0 %v3201_v29  ;;  %4495 = vmatprep.mubr.msk.bf16.mxu0 %vm1256_vm14, %v4669_v31 }
 0x94a   : > { %4499 = vmatprep.subr.bf16.mxu0 %v3278_v32 }
 0x94c   : > { %v3623_v63 = vpop.permute.xlu0 %3622  ;;  %v3628_v4 = vpop.permute.xlu1 %3627 }
 0x950   : > { %v3647_v0 = vpop.permute.xlu0 %3646  ;;  %v3652_v12 = vpop.permute.xlu1 %3651 }
 0x954   : > { %4496 = vmatmul.mubr.msk.bf16.vlgmr.msra.gmra.mrb[52].mxu0 %vm1256_vm14, %v4670_v33 }
 0x955   : > { %4500 = vmatpush3.bf16.msra.mxu0 %v3278_v32  ;;  %4501 = vmatprep.mubr.msk.bf16.mxu0 %vm1256_vm14, %v4671_v34 }
 0x956   : > { %4505 = vmatprep.subr.bf16.mxu0 %v3355_v35 }
 0x960   : > { %4502 = vmatmul.mubr.msk.bf16.vlgmr.msra.gmra.mrb[52].mxu0 %vm1256_vm14, %v4672_v36 }
 0x961   : > { %4506 = vmatpush3.bf16.msra.mxu0 %v3355_v35  ;;  %4507 = vmatprep.mubr.msk.bf16.mxu0 %vm1256_vm14, %v4673_v37 }
 0x962   : > { %4511 = vmatprep.subr.bf16.mxu0 %v3432_v38 }
 0x96c   : > { %4508 = vmatmul.mubr.msk.bf16.vlgmr.msra.gmra.mrb[52].mxu0 %vm1256_vm14, %v4674_v39 }
 0x96d   : > { %4512 = vmatpush3.bf16.msra.mxu0 %v3432_v38  ;;  %4513 = vmatprep.mubr.msk.bf16.mxu0 %vm1256_vm14, %v4675_v40 }
 0x96e   : > { %4517 = vmatprep.subr.bf16.mxu0 %v3509_v41 }
 0x978   : > { %4514 = vmatmul.mubr.msk.bf16.vlgmr.msra.gmra.mrb[52].mxu0 %vm1256_vm14, %v4676_v42 }
 0x979   : > { %4518 = vmatpush3.bf16.msra.mxu0 %v3509_v41  ;;  %4519 = vmatprep.mubr.msk.bf16.mxu0 %vm1256_vm14, %v4677_v43 }
 0x984   : > { %4520 = vmatmul.mubr.msk.bf16.vlgmr.msra.gmra.mrb[52].mxu0 %vm1256_vm14, %v4678_v44 }
 0xa57   : > { %v4521_v52 = vpop.f32.mrb[52].mxu0 }
 0xa58   : > { %v3604_v54 = vadd.f32 %v4521_v52, %v3595_v47  ;;  %v3551_v55 = vpop.f32.mrb[53].mxu0 }
 0xa59   : > { %v3602_v56 = vadd.f32 %v3585_v45, %v3551_v55  ;;  %v4522_v57 = vpop.f32.mrb[54].mxu0 }
 0xa5a   : > { %v3605_v58 = vadd.f32 %v4522_v57, %v3600_v49  ;;  %v3554_v59 = vpop.f32.mrb[55].mxu0  ;;  %v3608_v60 = vmax.f32 %v3604_v54, 0.0 }
 0xa5b   : > { %v3606_v61 = vmax.f32 %v3602_v56, 0.0  ;;  %v3603_v62 = vadd.f32 %v3590_v46, %v3554_v59 }
 0xa5c   : > { %v3609_v2 = vmax.f32 %v3605_v58, 0.0  ;;  %v3632_v6 = vmul.f32 %v3623_v63, %v3608_v60 }
 0xa5d   : > { %v3630_v1 = vmul.f32 %v3613_v48, %v3606_v61  ;;  %v3607_v3 = vmax.f32 %v3603_v62, 0.0 }
 0xa5e   : > { %v3633_v9 = vmul.f32 %v3628_v4, %v3609_v2  ;;  %v3656_v11 = vadd.f32 %v3647_v0, %v3632_v6 }
 0xa5f   : > { %v3654_v7 = vadd.f32 %v3637_v51, %v3630_v1  ;;  %v3631_v8 = vmul.f32 %v3618_v50, %v3607_v3 }
 0xa60   : > { %v3657_v13 = vadd.f32 %v3652_v12, %v3633_v9 }
 0xa61   : > { %v3655_v10 = vadd.f32 %v3642_v53, %v3631_v8  ;;  %3662 = vrot.lane.b32.xlu0 %v3654_v7, %s4688_s24 }
 0xa63   : > { %3664 = vrot.lane.b32.xlu1 %v3655_v10, %s4688_s24 }
 0xa65   : > { %3666 = vrot.lane.b32.xlu0 %v3656_v11, %s4688_s24 }
 0xa67   : > { %3668 = vrot.lane.b32.xlu1 %v3657_v13, %s4688_s24  ;;  %s4175_s24 = sshll.u32 %s5326_s19, 5 }
 0xa68   : > { %s224_s29 = scalar_lea.vmem %s5320_s5, %s4175_s24 }
 0xad3   : > { %v3663_v15 = vpop.permute.xlu0 %3662 }
 0xad4   : > { %v3674_v16 = vmax.f32 %v3654_v7, %v3663_v15 }
 0xad5   : > { %v3665_v17 = vpop.permute.xlu1 %3664 }
 0xad6   : > { %v3675_v18 = vmax.f32 %v3655_v10, %v3665_v17  ;;  %3682 = vrot.lane.b32.xlu0 %v3674_v16, %s4727_s13 }
 0xad7   : > { %v3667_v20 = vpop.permute.xlu0 %3666 }
 0xad8   : > { %v3676_v21 = vmax.f32 %v3656_v11, %v3667_v20  ;;  %3684 = vrot.lane.b32.xlu1 %v3675_v18, %s4727_s13 }
 0xad9   : > { %v3669_v22 = vpop.permute.xlu1 %3668 }
 0xada   : > { %v3677_v23 = vmax.f32 %v3657_v13, %v3669_v22  ;;  %3686 = vrot.lane.b32.xlu0 %v3676_v21, %s4727_s13 }
 0xadc   : > { %3688 = vrot.lane.b32.xlu1 %v3677_v23, %s4727_s13 }
 0xb48   : > { %v3683_v19 = vpop.permute.xlu0 %3682 }
 0xb49   : > { %v3694_v5 = vmax.f32 %v3674_v16, %v3683_v19 }
 0xb4a   : > { %v3685_v24 = vpop.permute.xlu1 %3684 }
 0xb4b   : > { %v3695_v25 = vmax.f32 %v3675_v18, %v3685_v24  ;;  %3803 = vrot.lane.b32.xlu0 %v3694_v5, %s4716_s11  ;;  %4525 = vmatprep.mubr.msk.f32.mxu1 %vm254_vm2, %v3694_v5 }
 0xb4c   : > { %v3687_v26 = vpop.permute.xlu0 %3686 }
 0xb4d   : > { %v3696_v27 = vmax.f32 %v3676_v21, %v3687_v26  ;;  %3805 = vrot.lane.b32.xlu1 %v3695_v25, %s4716_s11  ;;  %4526 = vmatmul.mubr.msk.f32.vlgmr.msra.gmra.mrb[80].mxu1 %vm254_vm2, %v3695_v25 }
 0xb4e   : > { %v3689_v28 = vpop.permute.xlu1 %3688  ;;  %4532 = vmatpush3.msk.msra.mxu1 %vm1937_vm10, %v4023_v14 }
 0xb4f   : > { %v3697_v29 = vmax.f32 %v3677_v23, %v3689_v28  ;;  %3807 = vrot.lane.b32.xlu0 %v3696_v27, %s4716_s11  ;;  %4528 = vmatprep.mubr.msk.f32.mxu1 %vm254_vm2, %v3696_v27 }
 0xb51   : > { %3809 = vrot.lane.b32.xlu1 %v3697_v29, %s4716_s11  ;;  %4529 = vmatmul.mubr.msk.f32.gmra.mrb[82].mxu1 %vm254_vm2, %v3697_v29  ;;  %s4731_s11 = smov 2  }
 0xbbd   : > { %v3804_v30 = vpop.permute.xlu0 %3803 }
 0xbbe   : > { %4533 = vmatprep.mubr.msk.f32.mxu1 %vm254_vm2, %v3804_v30 }
 0xbbf   : > { %v3806_v31 = vpop.permute.xlu1 %3805 }
 0xbc0   : > { %4534 = vmatmul.mubr.msk.f32.vlgmr.msra.gmra.mrb[84].mxu1 %vm254_vm2, %v3806_v31 }
 0xbc1   : > { %v3808_v32 = vpop.permute.xlu0 %3807 }
 0xbc2   : > { %4536 = vmatprep.mubr.msk.f32.mxu1 %vm254_vm2, %v3808_v32 }
 0xbc3   : > { %v3810_v33 = vpop.permute.xlu1 %3809 }
 0xbc4   : > { %4537 = vmatmul.mubr.msk.f32.gmra.mrb[86].mxu1 %vm254_vm2, %v3810_v33  ;;  %vm3920_vm2 = vcmask 31760  }
 0xc20   : > { %v4527_v34 = vpop.f32.mrb[80].mxu1 }
 0xc21   : > { %3800 = vst.msk [vmem:[%s224_s29 + $0x8] sm:$0xff] %vm3798_vm11, %v4527_v34  ;;  %v3779_v35 = vpop.f32.mrb[81].mxu1 }
 0xc22   : > { %3799 = vst.msk [vmem:[%s224_s29] sm:$0xff] %vm3798_vm11, %v3779_v35 }
 0xc24   : > { %v4530_v36 = vpop.f32.mrb[82].mxu1 }
 0xc25   : > { %3802 = vst.msk [vmem:[%s224_s29 + $0x18] sm:$0xff] %vm3798_vm11, %v4530_v36  ;;  %v3789_v37 = vpop.f32.mrb[83].mxu1 }
 0xc26   : > { %3801 = vst.msk [vmem:[%s224_s29 + $0x10] sm:$0xff] %vm3798_vm11, %v3789_v37 }
 0xc93   : > { %v4535_v38 = vpop.f32.mrb[84].mxu1 }
 0xc94   : > { %3910 = vrot.lane.b32.xlu1 %v4535_v38, %s4731_s11  ;;  %v3885_v39 = vpop.f32.mrb[85].mxu1 }
 0xc95   : > { %3908 = vrot.lane.b32.xlu0 %v3885_v39, %s4731_s11 }
 0xc97   : > { %v4538_v40 = vpop.f32.mrb[86].mxu1 }
 0xc98   : > { %3914 = vrot.lane.b32.xlu1 %v4538_v40, %s4731_s11  ;;  %v3895_v41 = vpop.f32.mrb[87].mxu1 }
 0xc99   : > { %3912 = vrot.lane.b32.xlu0 %v3895_v41, %s4731_s11 }
 0xd06   : > { %v3911_v42 = vpop.permute.xlu1 %3910 }
 0xd07   : > { %3922 = vst.msk [vmem:[%s224_s29 + $0x8] sm:$0xff] %vm3920_vm2, %v3911_v42  ;;  %v3909_v43 = vpop.permute.xlu0 %3908 }
 0xd08   : > { %3921 = vst.msk [vmem:[%s224_s29] sm:$0xff] %vm3920_vm2, %v3909_v43 }
 0xd0a   : > { %v3915_v44 = vpop.permute.xlu1 %3914 }
 0xd0b   : > { %3924 = vst.msk [vmem:[%s224_s29 + $0x18] sm:$0xff] %vm3920_vm2, %v3915_v44  ;;  %v3913_v45 = vpop.permute.xlu0 %3912 }
 0xd0c   : > { %3923 = vst.msk [vmem:[%s224_s29 + $0x10] sm:$0xff] %vm3920_vm2, %v3913_v45 }
 0xd0d PF: > { %s15_s18 = sadd.s32 1, %s4685_s18  }
 0xd0e   : > { %p12_p4 = scmp.ge.s32.totalorder %s15_s18, 4  }
 0xd10   :  { %14 = sbr.rel (!%p12_p4) target bundleno = 1 (0x1), region = 94 }

</bundles_post_ra>
